<compile_context>
chip_gen: v7x
topology: tpu7x:2x2x1
jax: 0.10.0
libtpu: 0.0.40
codegen_flags: <defaults>
</compile_context>

<pallas_src>
import numpy as np
import jax
import jax.numpy as jnp
from jax.experimental import pallas as pl
from jax.experimental.pallas import tpu as pltpu


# ----------------------------------------------------------------------------
# Pallas kernels
# ----------------------------------------------------------------------------

def _metapath_kernel(x_ref, wmix_ref, expmap_ref, repmap_ref, dst_ref, out_ref,
                     m_scr, denom_scr):
    """One (metapath m, edge-tile e) grid step.

    x_ref      : (Te, L*D)     f32  flattened metapath-instance features (zero rows = pad)
    wmix_ref   : (L*D, D+H)    f32  fused [rotation + 1/L mean | attn1+attn2] weights
    expmap_ref : (H, HD_pad)   f32  head h -> lanes [h*D, (h+1)*D) (zeros in pad lanes)
    repmap_ref : (D, HD_pad)   f32  feature d -> lanes {h*D+d} for all heads
    dst_ref    : (N, Te)       bf16 transposed destination one-hot (zero cols = pad)
    out_ref    : (N, HD_pad)   f32  resident accumulator over the edge grid axis
    m_scr      : (1, H)        f32  running column max (flash-style, cancels exactly)
    denom_scr  : (N, H)        f32  running edge-softmax denominators per node
    """
    H = m_scr.shape[1]
    D = repmap_ref.shape[0]
    e = pl.program_id(1)

    @pl.when(e == 0)
    def _():
        m_scr[...] = jnp.full(m_scr.shape, -jnp.inf, m_scr.dtype)
        denom_scr[...] = jnp.zeros(denom_scr.shape, denom_scr.dtype)
        out_ref[...] = jnp.zeros(out_ref.shape, out_ref.dtype)

    # One fat MXU matmul (K = L*D) gives both the rotated / averaged hidden state
    # and the attention logits (rotation, mean, attn1+attn2 pre-folded host-side).
    y = jnp.dot(x_ref[...], wmix_ref[...], preferred_element_type=jnp.float32)
    hidden = y[:, :D]                                    # (Te, D)
    z = y[:, D:]                                         # (Te, H)
    a = jnp.where(z > 0, z, 0.01 * z)                    # LeakyReLU(0.01)

    # Flash-style running max (numerics only: the shift cancels in the ratio).
    m_prev = m_scr[...]
    m_new = jnp.maximum(m_prev, jnp.max(a, axis=0, keepdims=True))
    scale = jnp.exp(m_prev - m_new)                      # (1, H); == 0 on first tile
    m_scr[...] = m_new
    ea = jnp.exp(a - m_new)                              # (Te, H)

    dst = dst_ref[...].astype(jnp.float32)               # (N, Te); bf16 in HBM/VMEM
    denom_scr[...] = denom_scr[...] * scale + jnp.dot(
        dst, ea, preferred_element_type=jnp.float32)     # (N, H)

    expmap = expmap_ref[...]                             # (H, HD_pad)
    ea_hd = jnp.dot(ea, expmap, preferred_element_type=jnp.float32)        # (Te, HD_pad)
    hid_hd = jnp.dot(hidden, repmap_ref[...],
                     preferred_element_type=jnp.float32)                   # (Te, HD_pad)
    msg = ea_hd * hid_hd                                                   # (Te, HD_pad)
    scale_hd = jnp.dot(scale, expmap, preferred_element_type=jnp.float32)  # (1, HD_pad)
    out_ref[...] = out_ref[...] * scale_hd + jnp.dot(
        dst, msg, preferred_element_type=jnp.float32)    # un-normalized node sums

    @pl.when(e == pl.num_programs(1) - 1)
    def _():
        den = denom_scr[...]
        inv = pl.reciprocal(jnp.where(den > 0, den, 1.0), approx=True)
        inv_hd = jnp.dot(inv, expmap, preferred_element_type=jnp.float32)
        out_ref[...] = out_ref[...] * inv_hd             # pad lanes stay exactly 0


def _combine_kernel(outs_ref, fc1w_ref, fc1b_ref, fc2w_ref, out_ref):
    # outs : (M, Nt, H*D)   ELU'd metapath outputs
    # fc1w : (H*D, A), fc1b : (1, A), fc2w : (1, A)
    # out  : (Nt, H*D)
    M, Nt, HD = outs_ref.shape

    # One batched fc1 matmul for all metapaths.
    x2d = jnp.concatenate([outs_ref[m] for m in range(M)], axis=0)      # (M*Nt, HD)
    f1 = jnp.tanh(jnp.dot(x2d, fc1w_ref[...],
                          preferred_element_type=jnp.float32)
                  + fc1b_ref[...])                                      # (M*Nt, A)
    fmean = jnp.concatenate(
        [jnp.mean(f1[m * Nt:(m + 1) * Nt, :], axis=0, keepdims=True)
         for m in range(M)], axis=0)                                    # (M, A)

    # fc2 ((A)->(1)) as a VPU sum-of-products instead of a tiny MXU dot.
    blog = jnp.sum(fmean * fc2w_ref[...], axis=1, keepdims=True)        # (M, 1)
    blog = blog - jnp.max(blog, axis=0, keepdims=True)
    eb = jnp.exp(blog)
    beta = eb / jnp.sum(eb, axis=0, keepdims=True)                      # softmax(dim=0)

    acc = beta[0:1, 0:1] * outs_ref[0]
    for m in range(1, M):
        acc = acc + beta[m:m + 1, 0:1] * outs_ref[m]
    out_ref[...] = acc


# ----------------------------------------------------------------------------
# Host-side constant folding (RotatE0 recurrence -> rotation matrix)
# ----------------------------------------------------------------------------

def _final_r_vec(r_vec, etypes, L, D):
    """RotatE0 final_r_vec recurrence (tiny, index-dependent) as in the PyTorch loop."""
    r = np.asarray(r_vec, np.float32)
    r = r / np.linalg.norm(r, axis=2, keepdims=True)                    # F.normalize dim=2
    r2 = np.stack([r, r], axis=1)
    r2[:, 1, :, 1] = -r2[:, 1, :, 1]
    r2 = r2.reshape(r.shape[0] * 2, r.shape[1], 2)                      # (2R, D/2, 2)

    final = np.zeros((L, D // 2, 2), np.float32)
    final[-1, :, 0] = 1.0
    for i in range(L - 2, -1, -1):
        if etypes[i] is not None:
            re = final[i + 1, :, 0] * r2[etypes[i], :, 0] - final[i + 1, :, 1] * r2[etypes[i], :, 1]
            im = final[i + 1, :, 0] * r2[etypes[i], :, 1] + final[i + 1, :, 1] * r2[etypes[i], :, 0]
            final[i, :, 0], final[i, :, 1] = re, im
        else:
            final[i] = final[i + 1]
    return final                                                        # (L, D/2, 2)


def _rotation_matrix(final, L, D):
    """(L*D, D) matrix R so that xflat @ R == mean_l rotate(x_l, final[l])."""
    R = np.zeros((L, D, D), np.float32)
    k = np.arange(D // 2)
    cre, cim = final[:, :, 0], final[:, :, 1]                           # (L, D/2)
    R[:, 2 * k, 2 * k] = cre
    R[:, 2 * k, 2 * k + 1] = cim
    R[:, 2 * k + 1, 2 * k] = -cim
    R[:, 2 * k + 1, 2 * k + 1] = cre
    return (R / L).reshape(L * D, D)                                    # fold 1/L mean


def _head_maps(H, D, HD_pad):
    """expmap (H, HD_pad): head->lanes; repmap (D, HD_pad): feature->lanes (per head)."""
    expmap = np.zeros((H, HD_pad), np.float32)
    repmap = np.zeros((D, HD_pad), np.float32)
    for h in range(H):
        expmap[h, h * D:(h + 1) * D] = 1.0
        repmap[np.arange(D), h * D + np.arange(D)] = 1.0
    return expmap, repmap


# ----------------------------------------------------------------------------
# Forward wrapper
# ----------------------------------------------------------------------------

def magnn_ctr_forward(inputs, params, etypes_list, num_heads, edge_tile=128):
    g_list, features, type_mask, edge_idx_list, target_idx_list = inputs
    del type_mask  # unused on this forward path (as in the PyTorch module)

    M = len(edge_idx_list)
    D = features.shape[1]
    H = num_heads
    L = edge_idx_list[0].shape[1]
    LD = L * D
    HD = H * D
    HD_pad = -(-HD // 128) * 128                    # lane-dense output slab
    Te = edge_tile                                  # raise (512..2048) for real sizes

    E_list = [int(e.shape[0]) for e in edge_idx_list]
    N_list = [int(g[0]) for g in g_list]
    E_pad = max(Te, -(-max(E_list) // Te) * Te)     # multiple of the edge tile
    N_pad = -(-max(N_list) // 8) * 8

    xflat_l, dst_l, wmix_l = [], [], []
    for m in range(M):
        edge_idx = edge_idx_list[m]
        _N_m, dst = g_list[m]
        E_m = E_list[m]

        # gather + flatten metapath-instance features (lane-dense L*D innermost)
        ed = features[edge_idx].reshape(E_m, LD)
        xflat_l.append(jnp.pad(ed, ((0, E_pad - E_m), (0, 0))))

        # transposed destination one-hot in bf16 (zero columns for padded edges)
        dstp = jnp.pad(dst, (0, E_pad - E_m), constant_values=-1)
        dst_l.append((jnp.arange(N_pad, dtype=jnp.int32)[:, None]
                      == dstp[None, :]).astype(jnp.bfloat16))           # (N_pad, E_pad)

        # fold rotation + mean + attention into one (L*D, D+H) matrix
        final = _final_r_vec(params['r_vec'], etypes_list[m], L, D)
        Rm = _rotation_matrix(final, L, D)                              # (LD, D)
        attn1_t = np.asarray(params['metapaths'][m]['attn1_w'], np.float32).T   # (D, H)
        attn2_t = np.asarray(params['metapaths'][m]['attn2'], np.float32)[0].T  # (D, H)
        wf = Rm @ attn2_t                                               # hidden-side logits
        wf[(L - 1) * D:, :] += attn1_t                                  # center-node logits
        wmix_l.append(np.concatenate([Rm, wf], axis=1))                 # (LD, D+H)

    xflat = jnp.stack(xflat_l)                                          # (M, E_pad, LD)
    dst_oht = jnp.stack(dst_l)                                          # (M, N_pad, E_pad) bf16
    wmix = jnp.asarray(np.stack(wmix_l), jnp.float32)                   # (M, LD, D+H)
    expmap_np, repmap_np = _head_maps(H, D, HD_pad)
    expmap = jnp.asarray(expmap_np)                                     # (H, HD_pad)
    repmap = jnp.asarray(repmap_np)                                     # (D, HD_pad)

    node_ft = pl.pallas_call(
        _metapath_kernel,
        out_shape=jax.ShapeDtypeStruct((M, N_pad, HD_pad), jnp.float32),
        grid_spec=pltpu.PrefetchScalarGridSpec(
            num_scalar_prefetch=0,
            grid=(M, E_pad // Te),
            in_specs=[
                pl.BlockSpec((None, Te, LD), lambda m, e: (m, e, 0)),
                pl.BlockSpec((None, LD, D + H), lambda m, e: (m, 0, 0)),
                pl.BlockSpec((H, HD_pad), lambda m, e: (0, 0)),
                pl.BlockSpec((D, HD_pad), lambda m, e: (0, 0)),
                pl.BlockSpec((None, N_pad, Te), lambda m, e: (m, 0, e)),
            ],
            out_specs=pl.BlockSpec((None, N_pad, HD_pad), lambda m, e: (m, 0, 0)),
            scratch_shapes=[pltpu.VMEM((1, H), jnp.float32),
                            pltpu.VMEM((N_pad, H), jnp.float32)],
        ),
        compiler_params=pltpu.CompilerParams(
            dimension_semantics=("parallel", "arbitrary")),
    )(xflat, wmix, expmap, repmap, dst_oht)

    # Target-row gather, strip lane padding, and ELU in the wrapper
    # (jax.nn.elu uses expm1, avoiding exp(x)-1 cancellation).
    outs = jnp.stack([jax.nn.elu(node_ft[m, target_idx_list[m], :HD]) for m in range(M)])

    vmem = pl.BlockSpec(memory_space=pltpu.MemorySpace.VMEM)
    h = pl.pallas_call(
        _combine_kernel,
        out_shape=jax.ShapeDtypeStruct(outs.shape[1:], jnp.float32),
        in_specs=[vmem] * 4,
        out_specs=vmem,
    )(outs, params['fc1_w'].T, params['fc1_b'][None, :], params['fc2_w'])
    return h


# ----------------------------------------------------------------------------
# Pure-JAX reference (mirrors the PyTorch semantics) for a sanity check
# ----------------------------------------------------------------------------

def _ref_metapath(features, edge_idx, dst, target_idx, num_nodes, etypes,
                  mp_params, r_vec, num_heads):
    E, L = edge_idx.shape
    D = features.shape[1]
    H = num_heads
    final = jnp.asarray(_final_r_vec(r_vec, etypes, L, D))              # (L, D/2, 2)
    ed = features[edge_idx].reshape(E, L, D // 2, 2)
    re = ed[..., 0] * final[None, :, :, 0] - ed[..., 1] * final[None, :, :, 1]
    im = ed[..., 0] * final[None, :, :, 1] + ed[..., 1] * final[None, :, :, 0]
    hidden = jnp.stack([re, im], axis=-1).reshape(E, L, D).mean(axis=1)  # (E, D)
    center = features[edge_idx[:, -1]]
    a1 = center @ mp_params['attn1_w'].T
    a2 = hidden @ mp_params['attn2'][0].T
    a = jax.nn.leaky_relu(a1 + a2, 0.01)
    amax = jax.ops.segment_max(a, dst, num_segments=num_nodes)[dst]
    ea = jnp.exp(a - amax)
    denom = jax.ops.segment_sum(ea, dst, num_segments=num_nodes)[dst]
    alpha = ea / denom
    ft = (alpha[:, :, None] * hidden[:, None, :]).reshape(E, H * D)
    node_ft = jax.ops.segment_sum(ft, dst, num_segments=num_nodes)
    return jax.nn.elu(node_ft[target_idx])


def _ref_forward(inputs, params, etypes_list, num_heads):
    g_list, features, type_mask, edge_idx_list, target_idx_list = inputs
    mp_outs = []
    for (num_nodes, dst), edge_idx, target_idx, mp_p, etypes in zip(
            g_list, edge_idx_list, target_idx_list, params['metapaths'], etypes_list):
        mp_outs.append(_ref_metapath(features, edge_idx, dst, target_idx,
                                     num_nodes, etypes, mp_p,
                                     params['r_vec'], num_heads))
    betas = []
    for out in mp_outs:
        f1 = jnp.tanh(out @ params['fc1_w'].T + params['fc1_b'])
        betas.append(jnp.mean(f1, axis=0) @ params['fc2_w'].T)          # (1,)
    beta = jax.nn.softmax(jnp.concatenate(betas, axis=0), axis=0)       # (M,)
    outs = jnp.stack(mp_outs, axis=0)
    return jnp.sum(beta[:, None, None] * outs, axis=0)


# ----------------------------------------------------------------------------
# Driver
# ----------------------------------------------------------------------------

if __name__ == "__main__":
    key = jax.random.PRNGKey(0)

    # module hyper-params (small, but large enough to exercise multiple edge tiles)
    num_metapaths = 2
    out_dim = 16            # D (must be even for RotatE)
    num_heads = 4           # H
    attn_vec_dim = 8        # A
    num_relations = 3       # r_vec has (R, D/2, 2); RotatE0 doubles to 2R
    etypes_list = [[0, 2], [5, None]]   # per-metapath etypes (length L-1 = 2)
    L = 3                   # metapath length

    n_feat_nodes = 60

    # deterministic parameters
    ks = jax.random.split(key, 2 * num_metapaths + 5)
    params = {'metapaths': []}
    ki = 0
    for _ in range(num_metapaths):
        w1 = 0.1 * jax.random.normal(ks[ki], (num_heads, out_dim), jnp.float32); ki += 1
        w2 = 0.1 * jax.random.normal(ks[ki], (1, num_heads, out_dim), jnp.float32); ki += 1
        params['metapaths'].append({'attn1_w': w1, 'attn2': w2})
    params['r_vec'] = jax.random.normal(ks[ki], (num_relations, out_dim // 2, 2), jnp.float32); ki += 1
    params['fc1_w'] = 0.1 * jax.random.normal(ks[ki], (attn_vec_dim, out_dim * num_heads), jnp.float32); ki += 1
    params['fc1_b'] = 0.1 * jax.random.normal(ks[ki], (attn_vec_dim,), jnp.float32); ki += 1
    params['fc2_w'] = 0.1 * jax.random.normal(ks[ki], (1, attn_vec_dim), jnp.float32); ki += 1

    # deterministic inputs
    features = jax.random.normal(ks[ki], (n_feat_nodes, out_dim), jnp.float32)
    type_mask = jnp.zeros((n_feat_nodes,), jnp.int32)   # unused on this path

    rng = np.random.RandomState(0)
    g_list, edge_idx_list, target_idx_list = [], [], []
    edge_counts = [260, 300]        # -> E_pad = 384 = 3 edge tiles of 128
    node_counts = [40, 48]
    n_targets = 8
    for m in range(num_metapaths):
        E, N = edge_counts[m], node_counts[m]
        edge_idx = jnp.asarray(rng.randint(0, n_feat_nodes, size=(E, L)), jnp.int32)
        dst = jnp.asarray(rng.randint(0, N, size=(E,)), jnp.int32)
        target_idx = jnp.asarray(rng.permutation(N)[:n_targets], jnp.int32)
        g_list.append((N, dst))          # minimal "graph": node count + edge dst ids
        edge_idx_list.append(edge_idx)
        target_idx_list.append(target_idx)

    inputs = (g_list, features, type_mask, edge_idx_list, target_idx_list)

    h = magnn_ctr_forward(inputs, params, etypes_list, num_heads)
    h = jax.block_until_ready(h)

    h_ref = _ref_forward(inputs, params, etypes_list, num_heads)
    np.testing.assert_allclose(np.asarray(h), np.asarray(h_ref), rtol=2e-2, atol=2e-2)

    assert h.shape == (n_targets, num_heads * out_dim)
    print("KERNEL_OK")
</pallas_src>

<mosaic_0001>
module attributes {stable_mosaic.version = 11 : i64} {
  func.func @_metapath_kernel(%arg0: i32, %arg1: i32, %arg2: memref<1x128x48xf32, #tpu.memory_space<vmem>>, %arg3: memref<1x48x20xf32, #tpu.memory_space<vmem>>, %arg4: memref<4x128xf32, #tpu.memory_space<vmem>>, %arg5: memref<16x128xf32, #tpu.memory_space<vmem>>, %arg6: memref<1x48x128xbf16, #tpu.memory_space<vmem>>, %arg7: memref<1x48x128xf32, #tpu.memory_space<vmem>>, %arg8: memref<1x4xf32, #tpu.memory_space<vmem>>, %arg9: memref<48x4xf32, #tpu.memory_space<vmem>>) attributes {dimension_semantics = [#tpu.dimension_semantics<parallel>, #tpu.dimension_semantics<arbitrary>], iteration_bounds = array<i64: 2, 3>, scalar_prefetch = 0 : i64, scratch_operands = 2 : i64, tpu.core_type = #tpu.core_type<tc>, window_params = [{transform_indices = @transform_0, window_bounds = array<i64: 1, 128, 48>}, {transform_indices = @transform_1, window_bounds = array<i64: 1, 48, 20>}, {pipeline_mode = #tpu.pipeline_mode<synchronous>, transform_indices = @transform_2, window_bounds = array<i64: 4, 128>}, {pipeline_mode = #tpu.pipeline_mode<synchronous>, transform_indices = @transform_3, window_bounds = array<i64: 16, 128>}, {transform_indices = @transform_4, window_bounds = array<i64: 1, 48, 128>}, {transform_indices = @transform_5, window_bounds = array<i64: 1, 48, 128>}]} {
    %c0_i32 = arith.constant 0 : i32
    %0 = arith.cmpi eq, %arg1, %c0_i32 : i32
    %1 = arith.extui %0 : i1 to i32
    %c0_i32_0 = arith.constant 0 : i32
    %2 = arith.cmpi ne, %1, %c0_i32_0 : i32
    scf.if %2 {
      %cst_36 = arith.constant 0xFF800000 : f32
      %52 = vector.broadcast %cst_36 : f32 to vector<1x4xf32>
      %c0_37 = arith.constant 0 : index
      %c0_38 = arith.constant 0 : index
      %53 = vector.load %arg8[%c0_37, %c0_38] : memref<1x4xf32, #tpu.memory_space<vmem>>, vector<1x4xf32>
      tpu.vector_store %arg8[%c0_37, %c0_38], %52 {strides = array<i32>} : memref<1x4xf32, #tpu.memory_space<vmem>>, vector<1x4xf32>,
      %cst_39 = arith.constant 0.000000e+00 : f32
      %54 = vector.broadcast %cst_39 : f32 to vector<48x4xf32>
      %c0_40 = arith.constant 0 : index
      %c0_41 = arith.constant 0 : index
      %55 = vector.load %arg9[%c0_40, %c0_41] : memref<48x4xf32, #tpu.memory_space<vmem>>, vector<48x4xf32>
      tpu.vector_store %arg9[%c0_40, %c0_41], %54 {strides = array<i32>} : memref<48x4xf32, #tpu.memory_space<vmem>>, vector<48x4xf32>,
      %cst_42 = arith.constant 0.000000e+00 : f32
      %56 = vector.broadcast %cst_42 : f32 to vector<48x128xf32>
      %c0_43 = arith.constant 0 : index
      %c0_44 = arith.constant 0 : index
      %c0_45 = arith.constant 0 : index
      %57 = vector.load %arg7[%c0_43, %c0_44, %c0_45] : memref<1x48x128xf32, #tpu.memory_space<vmem>>, vector<1x48x128xf32>
      %58 = vector.shape_cast %57 : vector<1x48x128xf32> to vector<48x128xf32>
      %59 = vector.shape_cast %56 : vector<48x128xf32> to vector<1x48x128xf32>
      tpu.vector_store %arg7[%c0_43, %c0_44, %c0_45], %59 {strides = array<i32>} : memref<1x48x128xf32, #tpu.memory_space<vmem>>, vector<1x48x128xf32>,
    } else {
    }
    %c0 = arith.constant 0 : index
    %c0_1 = arith.constant 0 : index
    %c0_2 = arith.constant 0 : index
    %3 = vector.load %arg2[%c0, %c0_1, %c0_2] : memref<1x128x48xf32, #tpu.memory_space<vmem>>, vector<1x128x48xf32>
    %4 = vector.shape_cast %3 : vector<1x128x48xf32> to vector<128x48xf32>
    %c0_3 = arith.constant 0 : index
    %c0_4 = arith.constant 0 : index
    %c0_5 = arith.constant 0 : index
    %5 = vector.load %arg3[%c0_3, %c0_4, %c0_5] : memref<1x48x20xf32, #tpu.memory_space<vmem>>, vector<1x48x20xf32>
    %6 = vector.shape_cast %5 : vector<1x48x20xf32> to vector<48x20xf32>
    %cst = arith.constant dense<0.000000e+00> : vector<128x20xf32>
    %7 = tpu.matmul %4, %6, %cst {dimension_numbers = #tpu.dot_dimension_numbers<[1], [0], [0], [1], [0, 0, 1, 1], [], []>} : vector<128x48xf32>, vector<48x20xf32>, vector<128x20xf32> -> vector<128x20xf32>
    %8 = vector.extract_strided_slice %7 {offsets = [0, 0], sizes = [128, 16], strides = [1, 1]} : vector<128x20xf32> to vector<128x16xf32>
    %9 = vector.extract_strided_slice %7 {offsets = [0, 16], sizes = [128, 4], strides = [1, 1]} : vector<128x20xf32> to vector<128x4xf32>
    %cst_6 = arith.constant 0.000000e+00 : f32
    %10 = vector.broadcast %cst_6 : f32 to vector<128x4xf32>
    %11 = arith.cmpf ogt, %9, %10 : vector<128x4xf32>
    %cst_7 = arith.constant 0.00999999977 : f32
    %12 = vector.broadcast %cst_7 : f32 to vector<128x4xf32>
    %13 = arith.mulf %12, %9 : vector<128x4xf32>
    %14 = arith.select %11, %9, %13 : vector<128x4xi1>, vector<128x4xf32>
    %c0_8 = arith.constant 0 : index
    %c0_9 = arith.constant 0 : index
    %15 = vector.load %arg8[%c0_8, %c0_9] : memref<1x4xf32, #tpu.memory_space<vmem>>, vector<1x4xf32>
    %cst_10 = arith.constant dense<0xFF800000> : vector<4xf32>
    %16 = vector.multi_reduction <maximumf>, %14, %cst_10 [0] : vector<128x4xf32> to vector<4xf32>
    %17 = vector.shape_cast %16 : vector<4xf32> to vector<1x4xf32>
    %18 = arith.maximumf %15, %17 : vector<1x4xf32>
    %19 = arith.subf %15, %18 : vector<1x4xf32>
    %20 = math.exp %19 : vector<1x4xf32>
    %c0_11 = arith.constant 0 : index
    %c0_12 = arith.constant 0 : index
    %21 = vector.load %arg8[%c0_11, %c0_12] : memref<1x4xf32, #tpu.memory_space<vmem>>, vector<1x4xf32>
    tpu.vector_store %arg8[%c0_11, %c0_12], %18 {strides = array<i32>} : memref<1x4xf32, #tpu.memory_space<vmem>>, vector<1x4xf32>,
    %22 = vector.broadcast %18 : vector<1x4xf32> to vector<128x4xf32>
    %23 = arith.subf %14, %22 : vector<128x4xf32>
    %24 = math.exp %23 : vector<128x4xf32>
    %c0_13 = arith.constant 0 : index
    %c0_14 = arith.constant 0 : index
    %c0_15 = arith.constant 0 : index
    %25 = vector.load %arg6[%c0_13, %c0_14, %c0_15] : memref<1x48x128xbf16, #tpu.memory_space<vmem>>, vector<1x48x128xbf16>
    %26 = vector.shape_cast %25 : vector<1x48x128xbf16> to vector<48x128xbf16>
    %27 = arith.extf %26 : vector<48x128xbf16> to vector<48x128xf32>
    %c0_16 = arith.constant 0 : index
    %c0_17 = arith.constant 0 : index
    %28 = vector.load %arg9[%c0_16, %c0_17] : memref<48x4xf32, #tpu.memory_space<vmem>>, vector<48x4xf32>
    %29 = vector.broadcast %20 : vector<1x4xf32> to vector<48x4xf32>
    %30 = arith.mulf %28, %29 : vector<48x4xf32>
    %cst_18 = arith.constant dense<0.000000e+00> : vector<48x4xf32>
    %31 = tpu.matmul %27, %24, %cst_18 {dimension_numbers = #tpu.dot_dimension_numbers<[1], [0], [0], [1], [0, 0, 1, 1], [], []>} : vector<48x128xf32>, vector<128x4xf32>, vector<48x4xf32> -> vector<48x4xf32>
    %32 = arith.addf %30, %31 : vector<48x4xf32>
    %c0_19 = arith.constant 0 : index
    %c0_20 = arith.constant 0 : index
    %33 = vector.load %arg9[%c0_19, %c0_20] : memref<48x4xf32, #tpu.memory_space<vmem>>, vector<48x4xf32>
    tpu.vector_store %arg9[%c0_19, %c0_20], %32 {strides = array<i32>} : memref<48x4xf32, #tpu.memory_space<vmem>>, vector<48x4xf32>,
    %c0_21 = arith.constant 0 : index
    %c0_22 = arith.constant 0 : index
    %34 = vector.load %arg4[%c0_21, %c0_22] : memref<4x128xf32, #tpu.memory_space<vmem>>, vector<4x128xf32>
    %cst_23 = arith.constant dense<0.000000e+00> : vector<128x128xf32>
    %35 = tpu.matmul %24, %34, %cst_23 {dimension_numbers = #tpu.dot_dimension_numbers<[1], [0], [0], [1], [0, 0, 1, 1], [], []>} : vector<128x4xf32>, vector<4x128xf32>, vector<128x128xf32> -> vector<128x128xf32>
    %c0_24 = arith.constant 0 : index
    %c0_25 = arith.constant 0 : index
    %36 = vector.load %arg5[%c0_24, %c0_25] : memref<16x128xf32, #tpu.memory_space<vmem>>, vector<16x128xf32>
    %cst_26 = arith.constant dense<0.000000e+00> : vector<128x128xf32>
    %37 = tpu.matmul %8, %36, %cst_26 {dimension_numbers = #tpu.dot_dimension_numbers<[1], [0], [0], [1], [0, 0, 1, 1], [], []>} : vector<128x16xf32>, vector<16x128xf32>, vector<128x128xf32> -> vector<128x128xf32>
    %38 = arith.mulf %35, %37 : vector<128x128xf32>
    %cst_27 = arith.constant dense<0.000000e+00> : vector<1x128xf32>
    %39 = tpu.matmul %20, %34, %cst_27 {dimension_numbers = #tpu.dot_dimension_numbers<[1], [0], [0], [1], [0, 0, 1, 1], [], []>} : vector<1x4xf32>, vector<4x128xf32>, vector<1x128xf32> -> vector<1x128xf32>
    %c0_28 = arith.constant 0 : index
    %c0_29 = arith.constant 0 : index
    %c0_30 = arith.constant 0 : index
    %40 = vector.load %arg7[%c0_28, %c0_29, %c0_30] : memref<1x48x128xf32, #tpu.memory_space<vmem>>, vector<1x48x128xf32>
    %41 = vector.shape_cast %40 : vector<1x48x128xf32> to vector<48x128xf32>
    %42 = vector.broadcast %39 : vector<1x128xf32> to vector<48x128xf32>
    %43 = arith.mulf %41, %42 : vector<48x128xf32>
    %cst_31 = arith.constant dense<0.000000e+00> : vector<48x128xf32>
    %44 = tpu.matmul %27, %38, %cst_31 {dimension_numbers = #tpu.dot_dimension_numbers<[1], [0], [0], [1], [0, 0, 1, 1], [], []>} : vector<48x128xf32>, vector<128x128xf32>, vector<48x128xf32> -> vector<48x128xf32>
    %45 = arith.addf %43, %44 : vector<48x128xf32>
    %c0_32 = arith.constant 0 : index
    %c0_33 = arith.constant 0 : index
    %c0_34 = arith.constant 0 : index
    %46 = vector.load %arg7[%c0_32, %c0_33, %c0_34] : memref<1x48x128xf32, #tpu.memory_space<vmem>>, vector<1x48x128xf32>
    %47 = vector.shape_cast %46 : vector<1x48x128xf32> to vector<48x128xf32>
    %48 = vector.shape_cast %45 : vector<48x128xf32> to vector<1x48x128xf32>
    tpu.vector_store %arg7[%c0_32, %c0_33, %c0_34], %48 {strides = array<i32>} : memref<1x48x128xf32, #tpu.memory_space<vmem>>, vector<1x48x128xf32>,
    %c2_i32 = arith.constant 2 : i32
    %49 = arith.cmpi eq, %arg1, %c2_i32 : i32
    %50 = arith.extui %49 : i1 to i32
    %c0_i32_35 = arith.constant 0 : i32
    %51 = arith.cmpi ne, %50, %c0_i32_35 : i32
    scf.if %51 {
      %c0_36 = arith.constant 0 : index
      %c0_37 = arith.constant 0 : index
      %52 = vector.load %arg9[%c0_36, %c0_37] : memref<48x4xf32, #tpu.memory_space<vmem>>, vector<48x4xf32>
      %cst_38 = arith.constant 0.000000e+00 : f32
      %53 = vector.broadcast %cst_38 : f32 to vector<48x4xf32>
      %54 = arith.cmpf ogt, %52, %53 : vector<48x4xf32>
      %cst_39 = arith.constant 1.000000e+00 : f32
      %55 = vector.broadcast %cst_39 : f32 to vector<48x4xf32>
      %56 = arith.select %54, %52, %55 : vector<48x4xi1>, vector<48x4xf32>
      %57 = tpu.reciprocal %56 {approx = true} : vector<48x4xf32> -> vector<48x4xf32>
      %cst_40 = arith.constant dense<0.000000e+00> : vector<48x128xf32>
      %58 = tpu.matmul %57, %34, %cst_40 {dimension_numbers = #tpu.dot_dimension_numbers<[1], [0], [0], [1], [0, 0, 1, 1], [], []>} : vector<48x4xf32>, vector<4x128xf32>, vector<48x128xf32> -> vector<48x128xf32>
      %c0_41 = arith.constant 0 : index
      %c0_42 = arith.constant 0 : index
      %c0_43 = arith.constant 0 : index
      %59 = vector.load %arg7[%c0_41, %c0_42, %c0_43] : memref<1x48x128xf32, #tpu.memory_space<vmem>>, vector<1x48x128xf32>
      %60 = vector.shape_cast %59 : vector<1x48x128xf32> to vector<48x128xf32>
      %61 = arith.mulf %60, %58 : vector<48x128xf32>
      %c0_44 = arith.constant 0 : index
      %c0_45 = arith.constant 0 : index
      %c0_46 = arith.constant 0 : index
      %62 = vector.load %arg7[%c0_44, %c0_45, %c0_46] : memref<1x48x128xf32, #tpu.memory_space<vmem>>, vector<1x48x128xf32>
      %63 = vector.shape_cast %62 : vector<1x48x128xf32> to vector<48x128xf32>
      %64 = vector.shape_cast %61 : vector<48x128xf32> to vector<1x48x128xf32>
      tpu.vector_store %arg7[%c0_44, %c0_45, %c0_46], %64 {strides = array<i32>} : memref<1x48x128xf32, #tpu.memory_space<vmem>>, vector<1x48x128xf32>,
    } else {
    }
    return
  }
  func.func @transform_0(%arg0: i32, %arg1: i32) -> (i32, i32, i32) {
    %c0_i32 = arith.constant 0 : i32
    %c0_i32_0 = arith.constant 0 : i32
    return %arg0, %arg1, %c0_i32 : i32, i32, i32
  }
  func.func @transform_1(%arg0: i32, %arg1: i32) -> (i32, i32, i32) {
    %c0_i32 = arith.constant 0 : i32
    %c0_i32_0 = arith.constant 0 : i32
    %c0_i32_1 = arith.constant 0 : i32
    return %arg0, %c0_i32, %c0_i32_0 : i32, i32, i32
  }
  func.func @transform_2(%arg0: i32, %arg1: i32) -> (i32, i32) {
    %c0_i32 = arith.constant 0 : i32
    %c0_i32_0 = arith.constant 0 : i32
    %c0_i32_1 = arith.constant 0 : i32
    return %c0_i32, %c0_i32_0 : i32, i32
  }
  func.func @transform_3(%arg0: i32, %arg1: i32) -> (i32, i32) {
    %c0_i32 = arith.constant 0 : i32
    %c0_i32_0 = arith.constant 0 : i32
    %c0_i32_1 = arith.constant 0 : i32
    return %c0_i32, %c0_i32_0 : i32, i32
  }
  func.func @transform_4(%arg0: i32, %arg1: i32) -> (i32, i32, i32) {
    %c0_i32 = arith.constant 0 : i32
    %c0_i32_0 = arith.constant 0 : i32
    return %arg0, %c0_i32, %arg1 : i32, i32, i32
  }
  func.func @transform_5(%arg0: i32, %arg1: i32) -> (i32, i32, i32) {
    %c0_i32 = arith.constant 0 : i32
    %c0_i32_0 = arith.constant 0 : i32
    %c0_i32_1 = arith.constant 0 : i32
    return %arg0, %c0_i32, %c0_i32_0 : i32, i32, i32
  }
}

</mosaic_0001>

<bundles_post_ra>
// kernel: tpu_custom_call.1
= control target key start
LH: loop header
LB: loop body
LE: loop exit
PB: predicated region body
PF: predicated region fallthrough
CT: control target
= control target key end

     0   :  { %s3267_s0 = inlined_call_operand.vmem [shape: f32[2,384,48], index: 0, kind: input, shape index: {}]   ;;  %s3268_s1 = inlined_call_operand.vmem [shape: f32[2,48,20], index: 1, kind: input, shape index: {}]   ;;  %s3269_s2 = inlined_call_operand.vmem [shape: f32[4,128], index: 2, kind: input, shape index: {}]   ;;  %s3270_s3 = inlined_call_operand.vmem [shape: f32[16,128], index: 3, kind: input, shape index: {}]   ;;  %s3271_s4 = inlined_call_operand.vmem [shape: bf16[2,48,384], index: 4, kind: input, shape index: {}]   ;;  %s3272_s5 = inlined_call_operand.hbm [shape: f32[2,48,128], index: 5, kind: output, shape index: {}]  }
   0x1   :  { %3278 = sst [smem:[#allocation12_spill]] %s3271_s4 }
   0x2   :  { %10 = vsyncpa [#allocation6], 0 }
   0x3   :  { %12 = vsyncpa [#allocation6 + $0x1], 0  ;;  %s2615_s18 = smov 0   ;;  %s2617_s19 = smov 0  }
   0x4   :  { %s2619_s20 = smov 0   ;;  %s2621_s21 = smov 0  }
   0x5   :  { %s2623_s22 = smov 0   ;;  %s2625_s23 = smov 0  }
   0x6   :  { %s2627_s24 = smov 0   ;;  %s2629_s25 = smov 0  }
   0x7   :  { %s2631_s26 = smov 0   ;;  %s2633_s27 = smov 0  }
   0x8 LB: > { %3279 = sst [smem:[#allocation8_spill]] %s2565_s25  ;;  %s1833_s28 = sadd.s32 4294967295, %s2573_s27   ;;  %s2573_s27 = sphi %s2633_s27, %s18_s27   ;;  %s2569_s26 = sphi %s2631_s26, %s3291_s26   ;;  %s2565_s25 = sphi %s2629_s25, %s3290_s25   ;;  %s2561_s24 = sphi %s2627_s24, %s3289_s24   ;;  %s2557_s23 = sphi %s2625_s23, %s3288_s23   ;;  %s2553_s22 = sphi %s2623_s22, %s3296_s22   ;;  %s2549_s21 = sphi %s2621_s21, %s3295_s21   ;;  %s2545_s20 = sphi %s2619_s20, %s3294_s20   ;;  %s2541_s19 = sphi %s2617_s19, %s3293_s19   ;;  %s2537_s18 = sphi %s2615_s18, %s3292_s18  }
   0x9   : > { %3280 = sst [smem:[#allocation9_spill]] %s2569_s26  ;;  %s1834_s29 = sadd.s32 4294967294, %s2573_s27  }
   0xa   : > { %s27_s30 = sadd.s32 1, %s2565_s25  ;;  %s30_s6 = sadd.s32 1, %s2569_s26 }
   0xb   : > { %p28_p0 = scmp.ge.s32.totalorder %s27_s30, 3  ;;  %s135_s7 = sadd.s32 1, %s2553_s22 }
   0xc   : > { %p142_p1 = scmp.ne.s32.totalorder %s2553_s22, %s2549_s21  ;;  %p143_p2 = scmp.eq.s32.totalorder %s2573_s27, 0 }
   0xd   : > { %s3298_s30 = smov (%p28_p0, %s27_s30), 0  ;;  %s3300_s6 = smov (!%p28_p0, %s30_s6), %s2569_s26 }
   0xe   : > { %3281 = sst [smem:[#allocation10_spill]] %s3298_s30  ;;  %s131_s8 = ssub.s32 %s2565_s25, %s3298_s30 }
   0xf   : > { %p2678_p3 = por %p143_p2, %p142_p1  ;;  %p32_p4 = scmp.ge.s32.totalorder %s3300_s6, 2 }
  0x10   : > { %s161_s10 = sadd.s32 1, %s2545_s20  ;;  %p171_p5 = scmp.ne.s32.totalorder %s2545_s20, %s2541_s19 }
  0x11   : > { %p172_p6 = scmp.eq.s32.totalorder %s1833_s28, 5  ;;  %s3302_s6 = smov (%p32_p4, %s3300_s6), 0 }
  0x12   : > { %3283 = sst [smem:[#allocation11_spill]] %s3302_s6  ;;  %p177_p8 = scmp.ne.s32.totalorder %s2541_s19, %s2537_s18 }
  0x13   : > { %p2687_p7 = por %p172_p6, %p171_p5  ;;  %s130_s12 = ssub.s32 %s2569_s26, %s3302_s6 }
  0x14   : > { %p178_p9 = scmp.eq.s32.totalorder %s1834_s29, 5  ;;  %s132_s13 = sor.u32 %s131_s8, %s130_s12 }
  0x15   : > { %p159_p10 = scmp.eq.s32.totalorder %s130_s12, 0  ;;  %p133_p11 = scmp.eq.s32.totalorder %s132_s13, 0 }
  0x16   : > { %p2695_p12 = por %p178_p9, %p177_p8  ;;  %p1836_p13 = scmp.ge.s32.totalorder %s2573_s27, 6 }
  0x17   : > { %s2700_s15 = scalar_select %p159_p10, %s2545_s20, %s161_s10  }
  0x18   : > { %s2703_s16 = scalar_select %p133_p11, %s2553_s22, %s135_s7  }
  0x19   : > { %200 = sbr.rel (%p1836_p13) target bundleno = 45 (0x2d), region = 24 }
  0x20   : > { %224 = sbr.rel (!%p2678_p3) target bundleno = 45 (0x2d), region = 36  ;;  %s226_s17 = sand.u32 (%p2678_p3), 1, %s2553_s22  }
  0x21   : > { %s2316_s28 = smul.u32 (%p2678_p3), 18, %s2569_s26  ;;  %s3286_s4 = sld [smem:[#allocation12_spill]] (%p2678_p3) }
  0x22   : > { %s2315_s29 = smul.u32 (%p2678_p3), 24, %s226_s17 }
  0x23   : > { %s230_s8 = sadd.s32 (%p2678_p3), %s2565_s25, %s2316_s28 }
  0x24   : > { %s1837_s12 = sshll.u32 (%p2678_p3), %s230_s8, 2  ;;  %s228_s7 = scalar_lea.vmem (%p2678_p3), [#allocation4], %s2315_s29 }
  0x27   : > { %s232_s10 = scalar_lea.vmem %s3286_s4, %s1837_s12 }
  0x28   : > { %v248_v0 = vld [vmem:[%s232_s10] sm:$0xf]  ;;  %v250_v1 = vld [vmem:[%s232_s10 + $0xc] sm:$0xf]  ;;  %v252_v2 = vld [vmem:[%s232_s10 + $0x18] sm:$0xf] }
  0x29   : > { %249 = vst [vmem:[%s228_s7] sm:$0xf] %v248_v0  ;;  %251 = vst [vmem:[%s228_s7 + $0x4] sm:$0xf] %v250_v1  ;;  %v254_v3 = vld [vmem:[%s232_s10 + $0x24] sm:$0xf] }
  0x2a   : > { %253 = vst [vmem:[%s228_s7 + $0x8] sm:$0xf] %v252_v2  ;;  %v256_v4 = vld [vmem:[%s232_s10 + $0x30] sm:$0xf]  ;;  %v258_v5 = vld [vmem:[%s232_s10 + $0x3c] sm:$0xf] }
  0x2b   : > { %255 = vst [vmem:[%s228_s7 + $0xc] sm:$0xf] %v254_v3  ;;  %257 = vst [vmem:[%s228_s7 + $0x10] sm:$0xf] %v256_v4 }
  0x2c   : > { %259 = vst [vmem:[%s228_s7 + $0x14] sm:$0xf] %v258_v5 }
  0x2d PF: > { %p1838_p0 = scmp.ge.s32.totalorder %s2573_s27, 1  ;;  %p293_p1 = scmp.lt.s32.totalorder %s2573_s27, 7 }
  0x2f   : > { %p294_p2 = pnand %p1838_p0, %p293_p1 }
  0x30   : > { %s300_s6 = sand.u32 (!%p294_p2), 1, %s2549_s21   ;;  %s3277_s9 = sand.u32 (!%p294_p2), 1, %s2541_s19  }
  0x31   : > { %297 = sbr.rel (%p294_p2) target bundleno = 1268 (0x4f4), region = 77  ;;  %s1839_s28 = sshll.u32 (!%p294_p2), %s2557_s23, 4 }
  0x32   : > { %s2317_s17 = smul.u32 (!%p294_p2), 24, %s300_s6  ;;  %p342_p3 = scmp.lt.s32.totalorder (!%p294_p2), %s2561_s24, 1 }
  0x33   : > { %s2318_s29 = smul.u32 (!%p294_p2), 48, %s3277_s9  ;;  %p344_p4 = scmp.lt.s32.totalorder (!%p294_p2), %s1839_s28, 47 }
  0x34   : > { %s2733_s6 = scalar_lea.vmem (!%p294_p2), [#allocation4], %s2317_s17  ;;  %p1842_p5 = scmp.ne.s32.totalorder (!%p294_p2), %s2557_s23, 0 }
  0x35   : > { %s2735_s9 = scalar_lea.vmem (!%p294_p2), [#allocation5], %s2318_s29 }
  0x38   : > { %s343_s8 = scalar_select %p342_p3, %s2561_s24, 1 }
  0x39   : > { %s3304_s28 = smov (!%p344_p4, %s1839_s28), 47  ;;  %359 = sbr.rel (%p1842_p5) target bundleno = 66 (0x42), region = 85 }
  0x3a   : > { %s2319_s12 = smul.u32 48, %s343_s8  ;;  %vm360_vm0 = vcmask (!%p1842_p5), 24576   ;;  %vm362_vm1 = vcmask (!%p1842_p5), 31744   ;;  %v2575_v6 = vmov (!%p1842_p5), -inf   ;;  %v2576_v7 = vmov (!%p1842_p5), 0.0  }
  0x3b   : > { %361 = vst.msk [vmem:[#allocation2] sm:$0x1] (!%p1842_p5), %vm360_vm0, %v2575_v6  ;;  %369 = vst [vmem:[%s2735_s9] sm:$0xff] (!%p1842_p5), %v2576_v7 }
  0x3c   : > { %s347_s13 = sadd.s32 %s2319_s12, %s3304_s28  ;;  %s2726_s4 = scalar_lea.vmem %s3268_s1, %s2319_s12  ;;  %363 = vst.msk [vmem:[#allocation3] sm:$0xff] (!%p1842_p5), %vm362_vm1, %v2576_v7  ;;  %364 = vst.msk [vmem:[#allocation3 + $0x8] sm:$0xff] (!%p1842_p5), %vm362_vm1, %v2576_v7 }
  0x3d   : > { %s1840_s30 = sshll.u32 %s347_s13, 3  ;;  %365 = vst.msk [vmem:[#allocation3 + $0x10] sm:$0xff] (!%p1842_p5), %vm362_vm1, %v2576_v7  ;;  %366 = vst.msk [vmem:[#allocation3 + $0x18] sm:$0xff] (!%p1842_p5), %vm362_vm1, %v2576_v7 }
  0x3e   : > { %s2731_s21 = scalar_lea.vmem %s3267_s0, %s1840_s30  ;;  %367 = vst.msk [vmem:[#allocation3 + $0x20] sm:$0xff] (!%p1842_p5), %vm362_vm1, %v2576_v7  ;;  %368 = vst.msk [vmem:[#allocation3 + $0x28] sm:$0xff] (!%p1842_p5), %vm362_vm1, %v2576_v7 }
  0x3f   : > { %370 = vst [vmem:[%s2735_s9 + $0x8] sm:$0xff] (!%p1842_p5), %v2576_v7  ;;  %371 = vst [vmem:[%s2735_s9 + $0x10] sm:$0xff] (!%p1842_p5), %v2576_v7 }
  0x40   : > { %372 = vst [vmem:[%s2735_s9 + $0x18] sm:$0xff] %v2576_v7  ;;  %373 = vst [vmem:[%s2735_s9 + $0x20] sm:$0xff] %v2576_v7 }
  0x41   : > { %374 = vst [vmem:[%s2735_s9 + $0x28] sm:$0xff] %v2576_v7 }
  0x42 PF: > { %v391_v8 = vld [vmem:[%s2726_s4] sm:$0xff]  ;;  %v392_v9 = vld [vmem:[%s2726_s4 + $0x8] sm:$0xff]  ;;  %v393_v10 = vld [vmem:[%s2726_s4 + $0x10] sm:$0xff]  ;;  %vm397_vm2 = vcmask 392192   ;;  %vm640_vm4 = vcmask 162944   ;;  %s2579_s25 = smov 16  }
  0x43   : > { %v2217_v11 = vpack.c.bf16 %v392_v9, %v391_v8  ;;  %v394_v12 = vld [vmem:[%s2726_s4 + $0x18] sm:$0xff]  ;;  %v395_v14 = vld [vmem:[%s2726_s4 + $0x20] sm:$0xff]  ;;  %v396_v15 = vld [vmem:[%s2726_s4 + $0x28] sm:$0xff]  ;;  %s2578_s4 = smov 112   ;;  %p1894_p6 = scmp.ne.s32.totalorder %s2557_s23, 2 }
  0x44   : > { %v2221_v13 = vpack.c.bf16 %v394_v12, %v393_v10  ;;  %v375_v16 = vld [vmem:[%s2731_s21] sm:$0xff]  ;;  %v2225_v17 = vpack.c.bf16 %v396_v15, %v395_v14  ;;  %v376_v18 = vld [vmem:[%s2731_s21 + $0x8] sm:$0xff]  ;;  %v377_v19 = vld [vmem:[%s2731_s21 + $0x10] sm:$0xff] }
  0x45   : > { %2218 = vmatprep.subr.bf16.mxu0 %v2217_v11  ;;  %2041 = vmatprep.mubr.msk.f32.mxu0 %vm397_vm2, %v375_v16  ;;  %v378_v20 = vld [vmem:[%s2731_s21 + $0x18] sm:$0xff]  ;;  %v379_v21 = vld [vmem:[%s2731_s21 + $0x20] sm:$0xff]  ;;  %v380_v22 = vld [vmem:[%s2731_s21 + $0x28] sm:$0xff] }
  0x46   : > { %2220 = vmatpush3.bf16.msra.mxu0 %v2217_v11  ;;  %v381_v23 = vld [vmem:[%s2731_s21 + $0x30] sm:$0xff]  ;;  %v382_v24 = vld [vmem:[%s2731_s21 + $0x38] sm:$0xff]  ;;  %v383_v25 = vld [vmem:[%s2731_s21 + $0x40] sm:$0xff] }
  0x47   : > { %2222 = vmatprep.subr.bf16.mxu0 %v2221_v13  ;;  %v384_v26 = vld [vmem:[%s2731_s21 + $0x48] sm:$0xff]  ;;  %v385_v27 = vld [vmem:[%s2731_s21 + $0x50] sm:$0xff]  ;;  %v386_v28 = vld [vmem:[%s2731_s21 + $0x58] sm:$0xff] }
  0x48   : > { %v387_v29 = vld [vmem:[%s2731_s21 + $0x60] sm:$0xff]  ;;  %v388_v30 = vld [vmem:[%s2731_s21 + $0x68] sm:$0xff]  ;;  %v389_v31 = vld [vmem:[%s2731_s21 + $0x70] sm:$0xff] }
  0x49   : > { %v390_v32 = vld [vmem:[%s2731_s21 + $0x78] sm:$0xff] }
  0x4a   : > { %2224 = vmatpush3.bf16.msra.mxu0 %v2221_v13 }
  0x4b   : > { %2226 = vmatprep.subr.bf16.mxu0 %v2225_v17 }
  0x4e   : > { %2228 = vmatpush3.bf16.msra.mxu0 %v2225_v17 }
  0x51   : > { %2042 = vmatmul.mubr.msk.f32.vlgmr.msra.gmra.mrb[0].mxu0 %vm397_vm2, %v376_v18 }
  0x52   : > { %2044 = vmatprep.mubr.msk.f32.mxu0 %vm397_vm2, %v377_v19 }
  0x55   : > { %2045 = vmatmul.mubr.msk.f32.gmra.mrb[2].mxu0 %vm397_vm2, %v378_v20 }
  0x56   : > { %2047 = vmatprep.mubr.msk.f32.mxu0 %vm397_vm2, %v379_v21 }
  0x59   : > { %2048 = vmatmul.mubr.msk.f32.gmra.mrb[4].mxu0 %vm397_vm2, %v380_v22 }
  0x5a   : > { %2050 = vmatprep.mubr.msk.f32.mxu0 %vm397_vm2, %v381_v23 }
  0x5d   : > { %2051 = vmatmul.mubr.msk.f32.gmra.mrb[6].mxu0 %vm397_vm2, %v382_v24 }
  0x5e   : > { %2053 = vmatprep.mubr.msk.f32.mxu0 %vm397_vm2, %v383_v25 }
  0x61   : > { %2054 = vmatmul.mubr.msk.f32.gmra.mrb[8].mxu0 %vm397_vm2, %v384_v26 }
  0x62   : > { %2056 = vmatprep.mubr.msk.f32.mxu0 %vm397_vm2, %v385_v27 }
  0x65   : > { %2057 = vmatmul.mubr.msk.f32.gmra.mrb[10].mxu0 %vm397_vm2, %v386_v28 }
  0x66   : > { %2059 = vmatprep.mubr.msk.f32.mxu0 %vm397_vm2, %v387_v29 }
  0x69   : > { %2060 = vmatmul.mubr.msk.f32.gmra.mrb[12].mxu0 %vm397_vm2, %v388_v30 }
  0x6a   : > { %2062 = vmatprep.mubr.msk.f32.mxu0 %vm397_vm2, %v389_v31 }
  0x6d   : > { %2063 = vmatmul.mubr.msk.f32.gmra.mrb[14].mxu0 %vm397_vm2, %v390_v32 }
 0x124   : > { %v2782_v33 = vpop.f32.mrb[0].mxu0 }
 0x125   : > { %v2784_v34 = vpop.f32.mrb[1].mxu0  ;;  %v608_v39 = vmul.f32 0.01, %v2782_v33  ;;  %vm592_vm3 = vcmp.gt.f32.partialorder %v2782_v33, 0.0 }
 0x126   : > { %vm591_vm5 = vcmp.gt.f32.partialorder %v2784_v34, 0.0  ;;  %v607_v43 = vmul.f32 0.01, %v2784_v34 }
 0x127   : > { %v2801_v42 = vsel %vm592_vm3, %v2782_v33, %v608_v39 }
 0x128   : > { %v2786_v35 = vpop.f32.mrb[2].mxu0  ;;  %v642_v52 = vsel %vm640_vm4, %v2801_v42, -inf  ;;  %v2826_v53 = vsel %vm591_vm5, %v2784_v34, %v607_v43  ;;  %vm993_vm5 = vcmask 1043456  }
 0x129   : > { %v2788_v36 = vpop.f32.mrb[3].mxu0  ;;  %v610_v44 = vmul.f32 0.01, %v2786_v35  ;;  %vm594_vm6 = vcmp.gt.f32.partialorder %v2786_v35, 0.0  ;;  %v641_v1 = vsel %vm640_vm4, %v2826_v53, -inf }
 0x12a   : > { %vm593_vm7 = vcmp.gt.f32.partialorder %v2788_v36, 0.0  ;;  %v609_v45 = vmul.f32 0.01, %v2788_v36 }
 0x12b   : > { %v2829_v54 = vsel %vm594_vm6, %v2786_v35, %v610_v44  ;;  %vm953_vm6 = vcmask 31744  }
 0x12c   : > { %v2790_v37 = vpop.f32.mrb[4].mxu0  ;;  %v2832_v55 = vsel %vm593_vm7, %v2788_v36, %v609_v45  ;;  %v644_v3 = vsel %vm640_vm4, %v2829_v54, -inf  ;;  %vm1144_vm7 = vcmask 130048  }
 0x12d   : > { %v2792_v38 = vpop.f32.mrb[5].mxu0  ;;  %v612_v46 = vmul.f32 0.01, %v2790_v37  ;;  %vm596_vm8 = vcmp.gt.f32.partialorder %v2790_v37, 0.0  ;;  %v643_v4 = vsel %vm640_vm4, %v2832_v55, -inf }
 0x12e   : > { %v611_v47 = vmul.f32 0.01, %v2792_v38  ;;  %vm595_vm9 = vcmp.gt.f32.partialorder %v2792_v38, 0.0 }
 0x12f   : > { %v2835_v56 = vsel %vm596_vm8, %v2790_v37, %v612_v46  ;;  %vm2581_vm8 = vmmov 0  }
 0x130   : > { %v2796_v40 = vpop.f32.mrb[6].mxu0  ;;  %v2838_v57 = vsel %vm595_vm9, %v2792_v38, %v611_v47  ;;  %v647_v5 = vsel %vm640_vm4, %v2835_v56, -inf }
 0x131   : > { %v2798_v41 = vpop.f32.mrb[7].mxu0  ;;  %v614_v48 = vmul.f32 0.01, %v2796_v40  ;;  %vm598_vm10 = vcmp.gt.f32.partialorder %v2796_v40, 0.0  ;;  %v645_v6 = vsel %vm640_vm4, %v2838_v57, -inf  ;;  %v648_v16 = vmax.f32 %v642_v52, %v647_v5 }
 0x132   : > { %v613_v50 = vmul.f32 0.01, %v2798_v41  ;;  %vm597_vm11 = vcmp.gt.f32.partialorder %v2798_v41, 0.0  ;;  %v646_v17 = vmax.f32 %v641_v1, %v645_v6  ;;  %v2577_v5 = vmov 1966171168  }
 0x133   : > { %v2841_v58 = vsel %vm598_vm10, %v2796_v40, %v614_v48  ;;  %v680_v6 = vunpack.c.l.s4 %v2577_v5 }
 0x134   : > { %v2813_v49 = vpop.f32.mrb[8].mxu0  ;;  %v2848_v62 = vsel %vm597_vm11, %v2798_v41, %v613_v50  ;;  %v651_v7 = vsel %vm640_vm4, %v2841_v58, -inf }
 0x135   : > { %v2818_v51 = vpop.f32.mrb[9].mxu0  ;;  %v616_v59 = vmul.f32 0.01, %v2813_v49  ;;  %vm600_vm12 = vcmp.gt.f32.partialorder %v2813_v49, 0.0  ;;  %v649_v8 = vsel %vm640_vm4, %v2848_v62, -inf  ;;  %v652_v19 = vmax.f32 %v644_v3, %v651_v7 }
 0x136   : > { %v615_v60 = vmul.f32 0.01, %v2818_v51  ;;  %vm599_vm13 = vcmp.gt.f32.partialorder %v2818_v51, 0.0  ;;  %v650_v23 = vmax.f32 %v643_v4, %v649_v8  ;;  %v682_v7 = vlaneseq }
 0x137   : > { %v2873_v9 = vsel %vm600_vm12, %v2813_v49, %v616_v59 }
 0x138   : > { %v2845_v61 = vpop.f32.mrb[10].mxu0  ;;  %v2876_v10 = vsel %vm599_vm13, %v2818_v51, %v615_v60  ;;  %v655_v20 = vsel %vm640_vm4, %v2873_v9, -inf }
 0x139   : > { %v618_v63 = vmul.f32 0.01, %v2845_v61  ;;  %v2853_v0 = vpop.f32.mrb[11].mxu0  ;;  %vm602_vm14 = vcmp.gt.f32.partialorder %v2845_v61, 0.0  ;;  %v653_v21 = vsel %vm640_vm4, %v2876_v10, -inf  ;;  %v656_v32 = vmax.f32 %v648_v16, %v655_v20 }
 0x13a   : > { %vm601_vm15 = vcmp.gt.f32.partialorder %v2853_v0, 0.0  ;;  %v617_v2 = vmul.f32 0.01, %v2853_v0  ;;  %v654_v39 = vmax.f32 %v646_v17, %v653_v21  ;;  %v681_v16 = vunpack.c.0.s8 %v680_v6 }
 0x13b   : > { %v2881_v12 = vsel %vm602_vm14, %v2845_v61, %v618_v63  ;;  %v683_v17 = vshrl.u32 %v682_v7, 7 }
 0x13c   : > { %v2878_v11 = vpop.f32.mrb[12].mxu0  ;;  %v2884_v13 = vsel %vm601_vm15, %v2853_v0, %v617_v2  ;;  %v659_v24 = vsel %vm640_vm4, %v2881_v12, -inf }
 0x13d   : > { %vm604_vm0 = vcmp.gt.f32.partialorder %v2878_v11, 0.0  ;;  %v620_v14 = vmul.f32 0.01, %v2878_v11  ;;  %v2888_v15 = vpop.f32.mrb[13].mxu0  ;;  %v657_v25 = vsel %vm640_vm4, %v2884_v13, -inf  ;;  %v660_v44 = vmax.f32 %v652_v19, %v659_v24 }
 0x13e   : > { %vm603_vm1 = vcmp.gt.f32.partialorder %v2888_v15, 0.0  ;;  %v619_v18 = vmul.f32 0.01, %v2888_v15  ;;  %v658_v45 = vmax.f32 %v650_v23, %v657_v25  ;;  %v684_v20 = vsub.s32 %v681_v16, %v683_v17  ;;  %v2929_v25 = vld [vmem:[#allocation2] sm:$0x1] }
 0x13f   : > { %v2897_v22 = vsel %vm604_vm0, %v2878_v11, %v620_v14 }
 0x140   : > { %v2904_v26 = vsel %vm603_vm1, %v2888_v15, %v619_v18  ;;  %v2906_v27 = vpop.f32.mrb[14].mxu0  ;;  %v663_v28 = vsel %vm640_vm4, %v2897_v22, -inf }
 0x141   : > { %v661_v29 = vsel %vm640_vm4, %v2904_v26, -inf  ;;  %vm606_vm2 = vcmp.gt.f32.partialorder %v2906_v27, 0.0  ;;  %v622_v30 = vmul.f32 0.01, %v2906_v27  ;;  %v2914_v31 = vpop.f32.mrb[15].mxu0  ;;  %v664_v47 = vmax.f32 %v656_v32, %v663_v28 }
 0x142   : > { %vm605_vm3 = vcmp.gt.f32.partialorder %v2914_v31, 0.0  ;;  %v621_v43 = vmul.f32 0.01, %v2914_v31  ;;  %v662_v48 = vmax.f32 %v654_v39, %v661_v29  ;;  %v2931_v28 = vsub.s32 0, %v683_v17 }
 0x143   : > { %v2919_v46 = vsel %vm606_vm2, %v2906_v27, %v622_v30 }
 0x144   : > { %v667_v50 = vsel %vm640_vm4, %v2919_v46, -inf  ;;  %v2924_v52 = vsel %vm605_vm3, %v2914_v31, %v621_v43  ;;  %v669_v1 = vmax.f32 %v662_v48, %v664_v47 }
 0x145   : > { %v668_v59 = vmax.f32 %v660_v44, %v667_v50  ;;  %v665_v60 = vsel %vm640_vm4, %v2924_v52, -inf  ;;  %vm700_vm4 = vcmask 24576  }
 0x146   : > { %v666_v63 = vmax.f32 %v658_v45, %v665_v60 }
 0x148   : > { %v670_v2 = vmax.f32 %v666_v63, %v668_v59 }
 0x14a   : > { %v671_v3 = vmax.f32 %v669_v1, %v670_v2 }
 0x14c   : > { %v672_v4 = vrot.slane %v671_v3, 4 }
 0x14e   : > { %v673_v8 = vmax.f32 %v671_v3, %v672_v4 }
 0x150   : > { %v674_v14 = vrot.slane %v673_v8, 2 }
 0x152   : > { %v675_v18 = vmax.f32 %v673_v8, %v674_v14 }
 0x154   : > { %v676_v19 = vrot.slane %v675_v18, 1 }
 0x156   : > { %v677_v21 = vmax.f32 %v675_v18, %v676_v19 }
 0x158   : > { %v685_v23 = vrot.slane %v677_v21, %v684_v20 }
 0x15a   : > { %v692_v24 = vrot.slane %v685_v23, %v684_v20 }
 0x15c   : > { %693 = vrot.lane.b32.xlu0 %v692_v24, %s2578_s4 }
 0x1ce   : > { %v694_v29 = vpop.permute.xlu0 %693 }
 0x1cf   : > { %v2934_v30 = vmax.f32 %v2929_v25, %v694_v29 }
 0x1d1   : > { %v697_v32 = vsub.f32 %v2929_v25, %v2934_v30  ;;  %701 = vst.msk [vmem:[#allocation2] sm:$0x1] %vm700_vm4, %v2934_v30  ;;  %v706_v39 = vrot.slane %v2934_v30, %v2931_v28 }
 0x1d3   : > { %707 = vrot.lane.b32.xlu0 %v706_v39, %s2579_s25 }
 0x245   : > { %v2941_v43 = vpop.permute.xlu0 %707 }
 0x246   : > { %v712_v44 = vsub.f32 %v2832_v55, %v2941_v43  ;;  %v710_v45 = vsub.f32 %v2826_v53, %v2941_v43  ;;  %v714_v47 = vsub.f32 %v2838_v57, %v2941_v43  ;;  %v711_v48 = vsub.f32 %v2801_v42, %v2941_v43 }
 0x247   : > { %v716_v63 = vsub.f32 %v2848_v62, %v2941_v43  ;;  %v713_v55 = vsub.f32 %v2829_v54, %v2941_v43  ;;  %v718_v57 = vsub.f32 %v2876_v10, %v2941_v43  ;;  %v715_v42 = vsub.f32 %v2835_v56, %v2941_v43 }
 0x248   : > { %v730_v50 = vmul.f32 1.442695, %v712_v44  ;;  %v726_v59 = vmul.f32 1.442695, %v710_v45  ;;  %v734_v60 = vmul.f32 1.442695, %v714_v47  ;;  %v720_v62 = vsub.f32 %v2884_v13, %v2941_v43 }
 0x249   : > { %v728_v1 = vmul.f32 1.442695, %v711_v48  ;;  %v738_v53 = vmul.f32 1.442695, %v716_v63  ;;  %v732_v2 = vmul.f32 1.442695, %v713_v55  ;;  %v717_v54 = vsub.f32 %v2841_v58, %v2941_v43 }
 0x24a   : > { %2417 = vpow2.f32 %v730_v50  ;;  %v742_v3 = vmul.f32 1.442695, %v718_v57  ;;  %v736_v4 = vmul.f32 1.442695, %v715_v42  ;;  %v746_v10 = vmul.f32 1.442695, %v720_v62 }
 0x24b   : > { %2419 = vpow2.f32 %v726_v59  ;;  %v722_v56 = vsub.f32 %v2904_v26, %v2941_v43  ;;  %v740_v7 = vmul.f32 1.442695, %v717_v54  ;;  %v719_v13 = vsub.f32 %v2873_v9, %v2941_v43  ;;  %v2988_v48 = vld [vmem:[%s2733_s6] sm:$0xff]   ;;  %v2991_v50 = vld [vmem:[%s2733_s6 + $0x8] sm:$0xff]  }
 0x24c   : > { %2421 = vpow2.f32 %v734_v60  ;;  %v724_v16 = vsub.f32 %v2924_v52, %v2941_v43  ;;  %v721_v26 = vsub.f32 %v2881_v12, %v2941_v43  ;;  %v723_v21 = vsub.f32 %v2897_v22, %v2941_v43 }
 0x24d   : > { %2423 = vpow2.f32 %v728_v1  ;;  %v750_v58 = vmul.f32 1.442695, %v722_v56  ;;  %v744_v17 = vmul.f32 1.442695, %v719_v13  ;;  %v725_v24 = vsub.f32 %v2919_v46, %v2941_v43 }
 0x24e   : > { %2425 = vpow2.f32 %v738_v53  ;;  %v754_v9 = vmul.f32 1.442695, %v724_v16  ;;  %v748_v20 = vmul.f32 1.442695, %v721_v26  ;;  %v752_v12 = vmul.f32 1.442695, %v723_v21 }
 0x24f   : > { %2427 = vpow2.f32 %v732_v2  ;;  %v756_v22 = vmul.f32 1.442695, %v725_v24  ;;  %v1907_v43 = vunpack.c.l.bf16 %v2988_v48  ;;  %v1911_v59 = vunpack.c.l.bf16 %v2991_v50  ;;  %v1142_v26 = vld [vmem:[%s3270_s3] sm:$0xff] }
 0x250   : > { %2429 = vpow2.f32 %v742_v3  ;;  %v1912_v24 = vunpack.c.h.bf16 %v2991_v50 }
 0x251   : > { %2431 = vpow2.f32 %v736_v4  ;;  %2097 = vmatprep.mubr.f32.mxu0 %v1907_v43  ;;  %2100 = vmatprep.mubr.f32.mxu1 %v1911_v59 }
 0x252   : > { %2433 = vpow2.f32 %v746_v10 }
 0x253   : > { %2435 = vpow2.f32 %v740_v7 }
 0x254   : > { %v2418_v5 = vpop.eup %2417  ;;  %2437 = vpow2.f32 %v750_v58 }
 0x255   : > { %v2420_v6 = vpop.eup %2419  ;;  %808 = vrot.lane.b32.xlu0 %v2418_v5, %s2578_s4  ;;  %2439 = vpow2.f32 %v744_v17 }
 0x256   : > { %804 = vrot.lane.b32.xlu1 %v2420_v6, %s2578_s4  ;;  %v2422_v8 = vpop.eup %2421  ;;  %2441 = vpow2.f32 %v754_v9 }
 0x257   : > { %v2424_v14 = vpop.eup %2423  ;;  %2443 = vpow2.f32 %v748_v20 }
 0x258   : > { %v2426_v18 = vpop.eup %2425  ;;  %2445 = vpow2.f32 %v752_v12  ;;  %v1908_v12 = vunpack.c.h.bf16 %v2988_v48  ;;  %v1426_v48 = vld [vmem:[%s2735_s9] sm:$0xff] }
 0x259   : > { %812 = vrot.lane.b32.xlu0 %v2422_v8, %s2578_s4  ;;  %v2428_v19 = vpop.eup %2427  ;;  %2447 = vpow2.f32 %v756_v22  ;;  %v2580_v22 = vmov 0.0  }
 0x25a   : > { %806 = vrot.lane.b32.xlu1 %v2424_v14, %s2578_s4  ;;  %v2430_v23 = vpop.eup %2429 }
 0x25b   : > { %v2432_v52 = vpop.eup %2431 }
 0x25c   : > { %v2434_v29 = vpop.eup %2433 }
 0x25d   : > { %816 = vrot.lane.b32.xlu0 %v2426_v18, %s2578_s4  ;;  %v2436_v39 = vpop.eup %2435  ;;  %v1143_v18 = vld [vmem:[%s3270_s3 + $0x8] sm:$0xff] }
 0x25e   : > { %810 = vrot.lane.b32.xlu1 %v2428_v19, %s2578_s4  ;;  %v2438_v44 = vpop.eup %2437  ;;  %v2261_v21 = vpack.c.bf16 %v1143_v18, %v1142_v26 }
 0x25f   : > { %v2440_v45 = vpop.eup %2439 }
 0x260   : > { %v2442_v47 = vpop.eup %2441 }
 0x261   : > { %820 = vrot.lane.b32.xlu0 %v2430_v23, %s2578_s4  ;;  %v2444_v46 = vpop.eup %2443  ;;  %v3051_v23 = vld [vmem:[%s3269_s2] sm:$0xf] }
 0x262   : > { %814 = vrot.lane.b32.xlu1 %v2432_v52, %s2578_s4  ;;  %v2446_v60 = vpop.eup %2445  ;;  %v3054_v52 = vld [vmem:[%s2733_s6 + $0x10] sm:$0xff]  }
 0x263   : > { %v2448_v63 = vpop.eup %2447 }
 0x265   : > { %824 = vrot.lane.b32.xlu0 %v2434_v29, %s2578_s4  ;;  %v1915_v29 = vunpack.c.l.bf16 %v3054_v52 }
 0x266   : > { %818 = vrot.lane.b32.xlu1 %v2436_v39, %s2578_s4  ;;  %v1916_v39 = vunpack.c.h.bf16 %v3054_v52 }
 0x269   : > { %828 = vrot.lane.b32.xlu0 %v2438_v44, %s2578_s4 }
 0x26a   : > { %822 = vrot.lane.b32.xlu1 %v2440_v45, %s2578_s4 }
 0x26d   : > { %832 = vrot.lane.b32.xlu0 %v2442_v47, %s2578_s4 }
 0x26e   : > { %826 = vrot.lane.b32.xlu1 %v2444_v46, %s2578_s4 }
 0x272   : > { %830 = vrot.lane.b32.xlu1 %v2446_v60, %s2578_s4 }
 0x276   : > { %834 = vrot.lane.b32.xlu1 %v2448_v63, %s2578_s4 }
 0x2c7   : > { %v3003_v1 = vpop.permute.xlu0 %808 }
 0x2c8   : > { %v3005_v55 = vpop.permute.xlu1 %804 }
 0x2cb   : > { %v3007_v53 = vpop.permute.xlu0 %812 }
 0x2cc   : > { %v3009_v57 = vpop.permute.xlu1 %806 }
 0x2cd   : > { %v2229_v2 = vpack.c.bf16 %v3009_v57, %v3005_v55 }
 0x2cf   : > { %2230 = vmatprep.subr.bf16.mxu0 %v2229_v2  ;;  %2297 = vmatprep.subr.bf16.mxu1 %v2229_v2  ;;  %v3013_v42 = vpop.permute.xlu0 %816 }
 0x2d0   : > { %2232 = vmatpush3.bf16.msra.mxu0 %v2229_v2  ;;  %2305 = vmatpush3.bf16.msra.mxu1 %v2229_v2  ;;  %v3015_v3 = vpop.permute.xlu1 %810 }
 0x2d1   : > { %v2233_v62 = vpack.c.bf16 %v3015_v3, %v3003_v1 }
 0x2d3   : > { %2234 = vmatprep.subr.bf16.mxu0 %v2233_v62  ;;  %2298 = vmatprep.subr.bf16.mxu1 %v2233_v62  ;;  %v3023_v5 = vpop.permute.xlu0 %820 }
 0x2d4   : > { %2236 = vmatpush3.bf16.msra.mxu0 %v2233_v62  ;;  %2306 = vmatpush3.bf16.msra.mxu1 %v2233_v62  ;;  %v3019_v4 = vpop.permute.xlu1 %814 }
 0x2d5   : > { %v2237_v54 = vpack.c.bf16 %v3019_v4, %v3007_v53 }
 0x2d7   : > { %2238 = vmatprep.subr.bf16.mxu0 %v2237_v54  ;;  %2299 = vmatprep.subr.bf16.mxu1 %v2237_v54  ;;  %v3029_v56 = vpop.permute.xlu0 %824 }
 0x2d8   : > { %2240 = vmatpush3.bf16.msra.mxu0 %v2237_v54  ;;  %2307 = vmatpush3.bf16.msra.mxu1 %v2237_v54  ;;  %v3025_v6 = vpop.permute.xlu1 %818 }
 0x2d9   : > { %v2241_v10 = vpack.c.bf16 %v3025_v6, %v3013_v42 }
 0x2db   : > { %2242 = vmatprep.subr.bf16.mxu0 %v2241_v10  ;;  %2300 = vmatprep.subr.bf16.mxu1 %v2241_v10  ;;  %v3039_v58 = vpop.permute.xlu0 %828 }
 0x2dc   : > { %2244 = vmatpush3.bf16.msra.mxu0 %v2241_v10  ;;  %2308 = vmatpush3.bf16.msra.mxu1 %v2241_v10  ;;  %v3031_v7 = vpop.permute.xlu1 %822 }
 0x2dd   : > { %v2245_v13 = vpack.c.bf16 %v3031_v7, %v3023_v5 }
 0x2df   : > { %2246 = vmatprep.subr.bf16.mxu0 %v2245_v13  ;;  %2301 = vmatprep.subr.bf16.mxu1 %v2245_v13  ;;  %v833_v19 = vpop.permute.xlu0 %832 }
 0x2e0   : > { %2248 = vmatpush3.bf16.msra.mxu0 %v2245_v13  ;;  %2309 = vmatpush3.bf16.msra.mxu1 %v2245_v13  ;;  %v3035_v8 = vpop.permute.xlu1 %826 }
 0x2e1   : > { %v2249_v14 = vpack.c.bf16 %v3035_v8, %v3029_v56 }
 0x2e3   : > { %2250 = vmatprep.subr.bf16.mxu0 %v2249_v14  ;;  %2302 = vmatprep.subr.bf16.mxu1 %v2249_v14 }
 0x2e4   : > { %2252 = vmatpush3.bf16.msra.mxu0 %v2249_v14  ;;  %2310 = vmatpush3.bf16.msra.mxu1 %v2249_v14  ;;  %v831_v16 = vpop.permute.xlu1 %830 }
 0x2e5   : > { %v2253_v17 = vpack.c.bf16 %v831_v16, %v3039_v58 }
 0x2e7   : > { %2254 = vmatprep.subr.bf16.mxu0 %v2253_v17  ;;  %2303 = vmatprep.subr.bf16.mxu1 %v2253_v17 }
 0x2e8   : > { %2256 = vmatpush3.bf16.msra.mxu0 %v2253_v17  ;;  %2311 = vmatpush3.bf16.msra.mxu1 %v2253_v17  ;;  %v835_v9 = vpop.permute.xlu1 %834 }
 0x2e9   : > { %v2257_v20 = vpack.c.bf16 %v835_v9, %v833_v19 }
 0x2eb   : > { %2258 = vmatprep.subr.bf16.mxu0 %v2257_v20  ;;  %2304 = vmatprep.subr.bf16.mxu1 %v2257_v20 }
 0x2ec   : > { %2260 = vmatpush3.bf16.msra.mxu0 %v2257_v20  ;;  %2312 = vmatpush3.bf16.msra.mxu1 %v2257_v20 }
 0x2ed   : > { %2262 = vmatprep.subr.bf16.mxu1 %v2261_v21  ;;  %2106 = vmatprep.subr.msk.mxu0 %vm993_vm5, %v3051_v23 }
 0x2ef   : > { %2098 = vmatmul.mubr.f32.vlgmr.msra.gmra.mrb[16].mxu0 %v1908_v12  ;;  %2101 = vmatmul.mubr.f32.vlgmr.msra.gmra.mrb[0].mxu1 %v1912_v24 }
 0x2f0   : > { %2108 = vmatprep.mubr.msk.f32.mxu0 %vm953_vm6, %v3005_v55  ;;  %2264 = vmatpush3.bf16.msra.mxu1 %v2261_v21 }
 0x2f1   : > { %2103 = vmatprep.mubr.f32.mxu1 %v1915_v29  ;;  %2107 = vmatpush3.msk.msra.mxu0 %vm993_vm5, %v3051_v23 }
 0x2f2   : > { %2160 = vmatprep.subr.mxu0 %v2580_v22 }
 0x2f3   : > { %2104 = vmatmul.mubr.f32.gmra.mrb[2].mxu1 %v1916_v39  ;;  %2109 = vmatmul.mubr.msk.f32.vlgmr.msra.gmra.mrb[18].mxu0 %vm953_vm6, %v3009_v57 }
 0x2f4   : > { %2111 = vmatprep.mubr.msk.f32.mxu0 %vm953_vm6, %v3003_v1  ;;  %2136 = vmatprep.mubr.msk.f32.mxu1 %vm1144_vm7, %v2784_v34 }
 0x2f5   : > { %2161 = vmatpush3.msk.msra.mxu0 %vm993_vm5, %v3051_v23 }
 0x2f6   : > { %2206 = vmatprep.subr.msk.mxu0 (!%p1894_p6), %vm993_vm5, %v3051_v23 }
 0x2f7   : > { %2112 = vmatmul.mubr.msk.f32.gmra.mrb[20].mxu0 %vm953_vm6, %v3015_v3  ;;  %2137 = vmatmul.mubr.msk.f32.vlgmr.msra.gmra.mrb[4].mxu1 %vm1144_vm7, %v2782_v33  ;;  %v698_v33 = vmul.f32 1.442695, %v697_v32  ;;  %v774_v32 = vld [vmem:[#allocation3 + $0x20] sm:$0xff] }
 0x2f8   : > { %2114 = vmatprep.mubr.msk.f32.mxu0 %vm953_vm6, %v3007_v53  ;;  %2139 = vmatprep.mubr.msk.f32.mxu1 %vm1144_vm7, %v2788_v36  ;;  %v771_v36 = vld [vmem:[#allocation3 + $0x8] sm:$0xff] }
 0x2f9   : > { %2449 = vpow2.f32 %v698_v33 }
 0x2fb   : > { %2115 = vmatmul.mubr.msk.f32.gmra.mrb[22].mxu0 %vm953_vm6, %v3019_v4  ;;  %2140 = vmatmul.mubr.msk.f32.gmra.mrb[6].mxu1 %vm1144_vm7, %v2786_v35 }
 0x2fc   : > { %2117 = vmatprep.mubr.msk.f32.mxu0 %vm953_vm6, %v3013_v42  ;;  %2142 = vmatprep.mubr.msk.f32.mxu1 %vm1144_vm7, %v2792_v38  ;;  %v770_v38 = vld [vmem:[#allocation3] sm:$0xff] }
 0x2ff   : > { %2118 = vmatmul.mubr.msk.f32.gmra.mrb[24].mxu0 %vm953_vm6, %v3025_v6  ;;  %2143 = vmatmul.mubr.msk.f32.gmra.mrb[8].mxu1 %vm1144_vm7, %v2790_v37  ;;  %v773_v37 = vld [vmem:[#allocation3 + $0x18] sm:$0xff] }
 0x300   : > { %2120 = vmatprep.mubr.msk.f32.mxu0 %vm953_vm6, %v3023_v5  ;;  %2145 = vmatprep.mubr.msk.f32.mxu1 %vm1144_vm7, %v2798_v41 }
 0x303   : > { %2121 = vmatmul.mubr.msk.f32.gmra.mrb[26].mxu0 %vm953_vm6, %v3031_v7  ;;  %2146 = vmatmul.mubr.msk.f32.gmra.mrb[10].mxu1 %vm1144_vm7, %v2796_v40  ;;  %v2450_v34 = vpop.eup %2449  ;;  %v772_v40 = vld [vmem:[#allocation3 + $0x10] sm:$0xff] }
 0x304   : > { %2123 = vmatprep.mubr.msk.f32.mxu0 %vm953_vm6, %v3029_v56  ;;  %2148 = vmatprep.mubr.msk.f32.mxu1 %vm1144_vm7, %v2818_v51  ;;  %v780_v35 = vrot.slane %v2450_v34, %v2931_v28 }
 0x306   : > { %v783_v41 = vmul.f32 %v780_v35, %v771_v36  ;;  %v786_v60 = vmul.f32 %v780_v35, %v774_v32 }
 0x307   : > { %2124 = vmatmul.mubr.msk.f32.gmra.mrb[28].mxu0 %vm953_vm6, %v3035_v8  ;;  %2149 = vmatmul.mubr.msk.f32.gmra.mrb[12].mxu1 %vm1144_vm7, %v2813_v49  ;;  %v785_v49 = vmul.f32 %v780_v35, %v773_v37 }
 0x308   : > { %2126 = vmatprep.mubr.msk.f32.mxu0 %vm953_vm6, %v3039_v58  ;;  %2151 = vmatprep.mubr.msk.f32.mxu1 %vm1144_vm7, %v2853_v0  ;;  %v782_v0 = vmul.f32 %v780_v35, %v770_v38 }
 0x30b   : > { %2127 = vmatmul.mubr.msk.f32.gmra.mrb[30].mxu0 %vm953_vm6, %v831_v16  ;;  %2152 = vmatmul.mubr.msk.f32.gmra.mrb[14].mxu1 %vm1144_vm7, %v2845_v61 }
 0x30c   : > { %2129 = vmatprep.mubr.msk.f32.mxu0 %vm953_vm6, %v833_v19  ;;  %2154 = vmatprep.mubr.msk.f32.mxu1 %vm1144_vm7, %v2888_v15  ;;  %v775_v15 = vld [vmem:[#allocation3 + $0x28] sm:$0xff] }
 0x30d   : > { %v787_v47 = vmul.f32 %v780_v35, %v775_v15 }
 0x30f   : > { %2130 = vmatmul.mubr.msk.f32.gmra.mrb[32].mxu0 %vm953_vm6, %v835_v9  ;;  %2155 = vmatmul.mubr.msk.f32.gmra.mrb[16].mxu1 %vm1144_vm7, %v2878_v11  ;;  %v784_v11 = vmul.f32 %v780_v35, %v772_v40 }
 0x310   : > { %2157 = vmatprep.mubr.msk.f32.mxu1 %vm1144_vm7, %v2914_v31  ;;  %2162 = vmatprep.mubr.msk.f32.mxu0 %vm2581_vm8, %v2580_v22 }
 0x313   : > { %2158 = vmatmul.mubr.msk.f32.gmra.mrb[18].mxu1 %vm1144_vm7, %v2906_v27  ;;  %2163 = vmatmul.mubr.msk.f32.vlgmr.msra.gmra.mrb[34].mxu0 %vm953_vm6, %v2450_v34 }
 0x314   : > { %2197 = vmatprep.mubr.f32.mxu1 %v1907_v43  ;;  %2207 = vmatpush3.msk.msra.mxu0 (!%p1894_p6), %vm993_vm5, %v3051_v23 }
 0x3c2   : > { %v2099_v51 = vpop.f32.mrb[16].mxu0  ;;  %v2102_v61 = vpop.f32.mrb[0].mxu1 }
 0x3c3   : > { %v948_v31 = vadd.f32 %v2099_v51, %v783_v41  ;;  %v950_v27 = vadd.f32 %v2102_v61, %v785_v49  ;;  %v918_v25 = vpop.f32.mrb[17].mxu0  ;;  %v928_v30 = vpop.f32.mrb[1].mxu1 }
 0x3c4   : > { %v947_v44 = vadd.f32 %v918_v25, %v782_v0  ;;  %v949_v45 = vadd.f32 %v928_v30, %v784_v11 }
 0x3c5   : > { %955 = vst.msk [vmem:[#allocation3 + $0x8] sm:$0xff] %vm953_vm6, %v948_v31  ;;  %957 = vst.msk [vmem:[#allocation3 + $0x18] sm:$0xff] %vm953_vm6, %v950_v27 }
 0x3c6   : > { %954 = vst.msk [vmem:[#allocation3] sm:$0xff] %vm953_vm6, %v947_v44  ;;  %956 = vst.msk [vmem:[#allocation3 + $0x10] sm:$0xff] %vm953_vm6, %v949_v45  ;;  %v2105_v46 = vpop.f32.mrb[2].mxu1  ;;  %v2110_v43 = vpop.f32.mrb[18].mxu0 }
 0x3c7   : > { %v952_v63 = vadd.f32 %v2105_v46, %v787_v47  ;;  %v938_v1 = vpop.f32.mrb[3].mxu1  ;;  %v1063_v55 = vpop.f32.mrb[19].mxu0 }
 0x3c8   : > { %v951_v53 = vadd.f32 %v938_v1, %v786_v60 }
 0x3c9   : > { %959 = vst.msk [vmem:[#allocation3 + $0x28] sm:$0xff] %vm953_vm6, %v952_v63 }
 0x3ca   : > { %958 = vst.msk [vmem:[#allocation3 + $0x20] sm:$0xff] %vm953_vm6, %v951_v53  ;;  %v2113_v57 = vpop.f32.mrb[20].mxu0  ;;  %v2138_v2 = vpop.f32.mrb[4].mxu1 }
 0x3cb   : > { %v1339_v42 = vmul.f32 %v2138_v2, %v2110_v43  ;;  %v1073_v3 = vpop.f32.mrb[21].mxu0  ;;  %v1259_v62 = vpop.f32.mrb[5].mxu1 }
 0x3cc   : > { %v1338_v4 = vmul.f32 %v1259_v62, %v1063_v55 }
 0x3ce   : > { %v2265_v54 = vpack.c.bf16 %v1339_v42, %v1338_v4  ;;  %v2116_v5 = vpop.f32.mrb[22].mxu0  ;;  %v2141_v6 = vpop.f32.mrb[6].mxu1 }
 0x3cf   : > { %v1341_v10 = vmul.f32 %v2141_v6, %v2113_v57  ;;  %v1083_v56 = vpop.f32.mrb[23].mxu0  ;;  %v1269_v7 = vpop.f32.mrb[7].mxu1 }
 0x3d0   : > { %v1340_v13 = vmul.f32 %v1269_v7, %v1073_v3  ;;  %2266 = vmatprep.subr.bf16.mxu1 %v2265_v54  ;;  %v1427_v3 = vld [vmem:[%s2735_s9 + $0x8] sm:$0xff] }
 0x3d1   : > { %2268 = vmatpush3.bf16.msra.mxu1 %v2265_v54  ;;  %v1428_v54 = vld [vmem:[%s2735_s9 + $0x10] sm:$0xff] }
 0x3d2   : > { %v2269_v8 = vpack.c.bf16 %v1341_v10, %v1340_v13  ;;  %v2119_v14 = vpop.f32.mrb[24].mxu0  ;;  %v2144_v58 = vpop.f32.mrb[8].mxu1 }
 0x3d3   : > { %v1343_v16 = vmul.f32 %v2144_v58, %v2116_v5  ;;  %v1093_v17 = vpop.f32.mrb[25].mxu0  ;;  %v1279_v26 = vpop.f32.mrb[9].mxu1 }
 0x3d4   : > { %v1342_v18 = vmul.f32 %v1279_v26, %v1083_v56  ;;  %2270 = vmatprep.subr.bf16.mxu1 %v2269_v8  ;;  %v1430_v56 = vld [vmem:[%s2735_s9 + $0x20] sm:$0xff] }
 0x3d5   : > { %2272 = vmatpush3.bf16.msra.mxu1 %v2269_v8  ;;  %v1555_v26 = vld [vmem:[#allocation3 + $0x10] sm:$0xff] (!%p1894_p6) }
 0x3d6   : > { %v2273_v19 = vpack.c.bf16 %v1343_v16, %v1342_v18  ;;  %v2122_v9 = vpop.f32.mrb[26].mxu0  ;;  %v2147_v20 = vpop.f32.mrb[10].mxu1  ;;  %v1556_v18 = vld [vmem:[#allocation3 + $0x18] sm:$0xff] (!%p1894_p6)  ;;  %vm1561_vm9 = vcmp.gt.f32.partialorder (!%p1894_p6), %v1555_v26, 0.0 }
 0x3d7   : > { %v1345_v21 = vmul.f32 %v2147_v20, %v2119_v14  ;;  %v1103_v22 = vpop.f32.mrb[27].mxu0  ;;  %v1289_v33 = vpop.f32.mrb[11].mxu1  ;;  %vm1562_vm10 = vcmp.gt.f32.partialorder (!%p1894_p6), %v1556_v18, 0.0  ;;  %v1557_v20 = vld [vmem:[#allocation3 + $0x20] sm:$0xff] (!%p1894_p6) }
 0x3d8   : > { %v1344_v34 = vmul.f32 %v1289_v33, %v1093_v17  ;;  %2274 = vmatprep.subr.bf16.mxu1 %v2273_v19  ;;  %v1568_v33 = vsel (!%p1894_p6), %vm1562_vm10, %v1556_v18, 1.0  ;;  %vm1563_vm13 = vcmp.gt.f32.partialorder (!%p1894_p6), %v1557_v20, 0.0 }
 0x3d9   : > { %2276 = vmatpush3.bf16.msra.mxu1 %v2273_v19  ;;  %v1553_v19 = vld [vmem:[#allocation3] sm:$0xff] (!%p1894_p6) }
 0x3da   : > { %v2277_v35 = vpack.c.bf16 %v1345_v21, %v1344_v34  ;;  %v2125_v36 = vpop.f32.mrb[28].mxu0  ;;  %v2150_v37 = vpop.f32.mrb[12].mxu1  ;;  %vm1559_vm11 = vcmp.gt.f32.partialorder (!%p1894_p6), %v1553_v19, 0.0  ;;  %v1558_v21 = vld [vmem:[#allocation3 + $0x28] sm:$0xff] (!%p1894_p6) }
 0x3db   : > { %v1347_v38 = vmul.f32 %v2150_v37, %v2122_v9  ;;  %v1113_v40 = vpop.f32.mrb[29].mxu0  ;;  %v1299_v41 = vpop.f32.mrb[13].mxu1  ;;  %v1554_v9 = vld [vmem:[#allocation3 + $0x8] sm:$0xff] (!%p1894_p6)  ;;  %v1565_v34 = vsel (!%p1894_p6), %vm1559_vm11, %v1553_v19, 1.0  ;;  %vm1564_vm14 = vcmp.gt.f32.partialorder (!%p1894_p6), %v1558_v21, 0.0 }
 0x3dc   : > { %v1346_v49 = vmul.f32 %v1299_v41, %v1103_v22  ;;  %2278 = vmatprep.subr.bf16.mxu1 %v2277_v35  ;;  %v1567_v22 = vsel (!%p1894_p6), %vm1561_vm9, %v1555_v26, 1.0  ;;  %vm1560_vm12 = vcmp.gt.f32.partialorder (!%p1894_p6), %v1554_v9, 0.0  ;;  %v1570_v37 = vsel (!%p1894_p6), %vm1564_vm14, %v1558_v21, 1.0 }
 0x3dd   : > { %2280 = vmatpush3.bf16.msra.mxu1 %v2277_v35  ;;  %2451 = vrcp.f32 (!%p1894_p6), %v1567_v22  ;;  %v1566_v35 = vsel (!%p1894_p6), %vm1560_vm12, %v1554_v9, 1.0 }
 0x3de   : > { %v2281_v51 = vpack.c.bf16 %v1347_v38, %v1346_v49  ;;  %v2128_v61 = vpop.f32.mrb[30].mxu0  ;;  %v2153_v0 = vpop.f32.mrb[14].mxu1  ;;  %2453 = vrcp.f32 (!%p1894_p6), %v1568_v33 }
 0x3df   : > { %v1349_v11 = vmul.f32 %v2153_v0, %v2125_v36  ;;  %v1123_v15 = vpop.f32.mrb[31].mxu0  ;;  %v1309_v31 = vpop.f32.mrb[15].mxu1  ;;  %v1569_v36 = vsel (!%p1894_p6), %vm1563_vm13, %v1557_v20, 1.0  ;;  %2455 = vrcp.f32 (!%p1894_p6), %v1565_v34 }
 0x3e0   : > { %v1348_v27 = vmul.f32 %v1309_v31, %v1113_v40  ;;  %2282 = vmatprep.subr.bf16.mxu1 %v2281_v51  ;;  %2457 = vrcp.f32 (!%p1894_p6), %v1566_v35 }
 0x3e1   : > { %2284 = vmatpush3.bf16.msra.mxu1 %v2281_v51  ;;  %2459 = vrcp.f32 (!%p1894_p6), %v1569_v36 }
 0x3e2   : > { %v2285_v25 = vpack.c.bf16 %v1349_v11, %v1348_v27  ;;  %v2131_v30 = vpop.f32.mrb[32].mxu0  ;;  %v2156_v32 = vpop.f32.mrb[16].mxu1  ;;  %2461 = vrcp.f32 (!%p1894_p6), %v1570_v37 }
 0x3e3   : > { %v1351_v44 = vmul.f32 %v2156_v32, %v2128_v61  ;;  %v1133_v45 = vpop.f32.mrb[33].mxu0  ;;  %v1319_v47 = vpop.f32.mrb[17].mxu1 }
 0x3e4   : > { %v1350_v46 = vmul.f32 %v1319_v47, %v1123_v15  ;;  %2286 = vmatprep.subr.bf16.mxu1 %v2285_v25 }
 0x3e5   : > { %2288 = vmatpush3.bf16.msra.mxu1 %v2285_v25 }
 0x3e6   : > { %v2289_v43 = vpack.c.bf16 %v1351_v44, %v1350_v46  ;;  %v2159_v60 = vpop.f32.mrb[18].mxu1  ;;  %v1422_v63 = vpop.f32.mrb[34].mxu0 }
 0x3e7   : > { %v1353_v1 = vmul.f32 %v2159_v60, %v2131_v30  ;;  %v1329_v55 = vpop.f32.mrb[19].mxu1  ;;  %v2164_v53 = vpop.f32.mrb[35].mxu0  ;;  %v1435_v42 = vrot.slane %v1422_v63, %v2931_v28 }
 0x3e8   : > { %v1352_v57 = vmul.f32 %v1329_v55, %v1133_v45  ;;  %2290 = vmatprep.subr.bf16.mxu1 %v2289_v43 }
 0x3e9   : > { %2292 = vmatpush3.bf16.msra.mxu1 %v2289_v43  ;;  %v1436_v4 = vmul.f32 %v1435_v42, %v1426_v48  ;;  %v1438_v28 = vmul.f32 %v1435_v42, %v1428_v54  ;;  %v1440_v14 = vmul.f32 %v1435_v42, %v1430_v56 }
 0x3ea   : > { %v2293_v2 = vpack.c.bf16 %v1353_v1, %v1352_v57 }
 0x3ec   : > { %2294 = vmatprep.subr.bf16.mxu1 %v2293_v2 }
 0x3ed   : > { %2296 = vmatpush3.bf16.msra.mxu1 %v2293_v2 }
 0x3ee   : > { %2313 = vmatprep.subr.msk.mxu1 (!%p1894_p6), %vm993_vm5, %v3051_v23 }
 0x3f0   : > { %2198 = vmatmul.mubr.f32.vlgmr.msra.gmra.mrb[20].mxu1 %v1908_v12  ;;  %v1437_v12 = vmul.f32 %v1435_v42, %v1427_v3 }
 0x3f1   : > { %2200 = vmatprep.mubr.f32.mxu1 %v1911_v59  ;;  %v1429_v59 = vld [vmem:[%s2735_s9 + $0x18] sm:$0xff]  ;;  %2314 = vmatpush3.msk.msra.mxu1 (!%p1894_p6), %vm993_vm5, %v3051_v23  ;;  %v2452_v23 = vpop.eup (!%p1894_p6), %2451 }
 0x3f2   : > { %v2454_v38 = vpop.eup (!%p1894_p6), %2453 }
 0x3f3   : > { %v2456_v40 = vpop.eup (!%p1894_p6), %2455 }
 0x3f4   : > { %2201 = vmatmul.mubr.f32.gmra.mrb[22].mxu1 %v1912_v24  ;;  %v2458_v41 = vpop.eup (!%p1894_p6), %2457  ;;  %2208 = vmatprep.mubr.msk.f32.mxu0 (!%p1894_p6), %vm953_vm6, %v2456_v40 }
 0x3f5   : > { %2203 = vmatprep.mubr.f32.mxu1 %v1915_v29  ;;  %v1439_v29 = vmul.f32 %v1435_v42, %v1429_v59  ;;  %v2460_v49 = vpop.eup (!%p1894_p6), %2459  ;;  %2209 = vmatmul.mubr.msk.f32.vlgmr.msra.gmra.mrb[0].mxu0 (!%p1894_p6), %vm953_vm6, %v2458_v41 }
 0x3f6   : > { %v2462_v51 = vpop.eup (!%p1894_p6), %2461 }
 0x3f8   : > { %2204 = vmatmul.mubr.f32.gmra.mrb[24].mxu1 %v1916_v39  ;;  %v1431_v39 = vld [vmem:[%s2735_s9 + $0x28] sm:$0xff] }
 0x3f9   : > { %v1441_v13 = vmul.f32 %v1435_v42, %v1431_v39  ;;  %2211 = vmatprep.mubr.msk.f32.mxu1 (!%p1894_p6), %vm953_vm6, %v2452_v23 }
 0x3fc   : > { %2212 = vmatmul.mubr.msk.f32.vlgmr.msra.gmra.mrb[0].mxu1 (!%p1894_p6), %vm953_vm6, %v2454_v38 }
 0x3fd   : > { %2214 = vmatprep.mubr.msk.f32.mxu1 (!%p1894_p6), %vm953_vm6, %v2460_v49 }
 0x400   : > { %2215 = vmatmul.mubr.msk.f32.gmra.mrb[2].mxu1 (!%p1894_p6), %vm953_vm6, %v2462_v51 }
 0x4c3   : > { %v2199_v62 = vpop.f32.mrb[20].mxu1 }
 0x4c4   : > { %v1538_v50 = vadd.f32 %v2199_v62, %v1437_v12  ;;  %v1508_v24 = vpop.f32.mrb[21].mxu1 }
 0x4c5   : > { %v1537_v5 = vadd.f32 %v1508_v24, %v1436_v4 }
 0x4c6   : > { %1544 = vst [vmem:[%s2735_s9 + $0x8] sm:$0xff] %v1538_v50 }
 0x4c7   : > { %1543 = vst [vmem:[%s2735_s9] sm:$0xff] %v1537_v5  ;;  %v2202_v52 = vpop.f32.mrb[22].mxu1 }
 0x4c8   : > { %v1540_v6 = vadd.f32 %v2202_v52, %v1439_v29  ;;  %v1518_v10 = vpop.f32.mrb[23].mxu1  ;;  %v2210_v32 = vpop.f32.mrb[0].mxu0 (!%p1894_p6) }
 0x4c9   : > { %v1539_v7 = vadd.f32 %v1518_v10, %v1438_v28  ;;  %1552 = sbr.rel (%p1894_p6) target bundleno = 1242 (0x4da), region = 89  ;;  %v1661_v47 = vpop.f32.mrb[1].mxu0 (!%p1894_p6) }
 0x4ca   : > { %1546 = vst [vmem:[%s2735_s9 + $0x18] sm:$0xff] %v1540_v6 }
 0x4cb   : > { %1545 = vst [vmem:[%s2735_s9 + $0x10] sm:$0xff] %v1539_v7  ;;  %v2205_v8 = vpop.f32.mrb[24].mxu1 }
 0x4cc   : > { %v1542_v58 = vadd.f32 %v2205_v8, %v1441_v13  ;;  %v1528_v16 = vpop.f32.mrb[25].mxu1 }
 0x4cd   : > { %v1541_v17 = vadd.f32 %v1528_v16, %v1440_v14  ;;  %v1691_v15 = vld [vmem:[%s2735_s9 + $0x8] sm:$0xff] (!%p1894_p6) }
 0x4ce   : > { %1548 = vst [vmem:[%s2735_s9 + $0x28] sm:$0xff] %v1542_v58  ;;  %v1690_v25 = vld [vmem:[%s2735_s9] sm:$0xff] (!%p1894_p6)  ;;  %v1697_v45 = vmul.f32 (!%p1894_p6), %v2210_v32, %v1691_v15 }
 0x4cf   : > { %1547 = vst [vmem:[%s2735_s9 + $0x20] sm:$0xff] %v1541_v17  ;;  %v2213_v11 = vpop.f32.mrb[0].mxu1 (!%p1894_p6)  ;;  %v1696_v43 = vmul.f32 (!%p1894_p6), %v1690_v25, %v1661_v47 }
 0x4d0   : > { %v1671_v27 = vpop.f32.mrb[1].mxu1  ;;  %1703 = vst [vmem:[%s2735_s9 + $0x8] sm:$0xff] %v1697_v45 }
 0x4d1   : > { %v1693_v61 = vld [vmem:[%s2735_s9 + $0x18] sm:$0xff]  ;;  %1702 = vst [vmem:[%s2735_s9] sm:$0xff] %v1696_v43 }
 0x4d2   : > { %v1692_v0 = vld [vmem:[%s2735_s9 + $0x10] sm:$0xff]  ;;  %v1699_v31 = vmul.f32 %v2213_v11, %v1693_v61 }
 0x4d3   : > { %v1698_v30 = vmul.f32 %v1692_v0, %v1671_v27  ;;  %v2216_v60 = vpop.f32.mrb[2].mxu1 }
 0x4d4   : > { %1705 = vst [vmem:[%s2735_s9 + $0x18] sm:$0xff] %v1699_v31  ;;  %v1681_v1 = vpop.f32.mrb[3].mxu1 }
 0x4d5   : > { %v1695_v44 = vld [vmem:[%s2735_s9 + $0x28] sm:$0xff]  ;;  %1704 = vst [vmem:[%s2735_s9 + $0x10] sm:$0xff] %v1698_v30 }
 0x4d6   : > { %v1694_v46 = vld [vmem:[%s2735_s9 + $0x20] sm:$0xff]  ;;  %v1701_v63 = vmul.f32 %v2216_v60, %v1695_v44 }
 0x4d7   : > { %v1700_v55 = vmul.f32 %v1694_v46, %v1681_v1 }
 0x4d8   : > { %1707 = vst [vmem:[%s2735_s9 + $0x28] sm:$0xff] %v1701_v63 }
 0x4d9   : > { %1706 = vst [vmem:[%s2735_s9 + $0x20] sm:$0xff] %v1700_v55 }
 0x4da PF: > { %s2320_s23 = smul.u32 768, %s2561_s24  ;;  %s1722_s12 = sshll.u32 %s2735_s9, 4  ;;  %s3205_s12 = int_to_ptr.vmem [resolvable:$true] %s1722_s12 }
 0x4db   : > { %s3287_s21 = sand.u32 1, %s2541_s19   ;;  %s2463_s4 = scalar_lea.vmem %s3205_s12, 768 }
 0x4dc   : > { %s3203_s7 = scalar_lea.hbm %s3272_s5, %s2320_s23  ;;  %s3209_s6 = scalar_lea.sflag [#allocation6], %s3287_s21 }
 0x4dd   : > { %p2464_p8 = scmp.ne.s32.totalorder %s3205_s12, %s2463_s4  ;;  %s2582_s24 = smov [#allocation5]  }
 0x4de   : > { %s2467_s9 = sshll.u32 %s2582_s24, 4  ;;  %s2468_s9 = int_to_ptr.vmem [resolvable:$false] %s2467_s9 }
 0x4df   : > { %p2465_p9 = pnand %p2464_p8, %p2687_p7  ;;  %s2469_s25 = scalar_lea.vmem %s2468_s9, 1536 }
 0x4e0   : > { %p2470_p11 = scmp.lt.s32.totalorder %s3205_s12, %s2468_s9  ;;  %p2471_p13 = scmp.lt.s32.totalorder %s2469_s25, %s2463_s4 }
 0x4e1   : > { %p2466_p10 = pneg %p2465_p9 }
 0x4e2   : > { %p2472_p0 = por %p2471_p13, %p2470_p11 }
 0x4e4   : > { %p2473_p1 = pnand %p2472_p0, %p2466_p10 }
 0x4e6   : > { %2476 = shalt.err (!%p2473_p1)
}
 0x4e7   : > { %s2477_s26 = scalar_lea.hbm %s3203_s7, 768  ;;  %s2481_s28 = scalar_lea.hbm %s3272_s5, 1536 }
 0x4e8   : > { %p2478_p2 = scmp.ne.s32.totalorder %s3203_s7, %s2477_s26  ;;  %p2482_p5 = scmp.lt.u32.totalorder %s3203_s7, %s3272_s5 }
 0x4e9   : > { %p2483_p6 = scmp.lt.u32.totalorder %s2481_s28, %s2477_s26  ;;  %p2485_p9 = scmp.lt.u32.totalorder %s2477_s26, %s3203_s7 }
 0x4ea   : > { %p2479_p3 = pnand %p2478_p2, %p2687_p7 }
 0x4eb   : > { %p2484_p8 = por %p2483_p6, %p2482_p5 }
 0x4ec   : > { %p2480_p4 = pneg %p2479_p3 }
 0x4ed   : > { %p2486_p10 = por %p2485_p9, %p2484_p8 }
 0x4ef   : > { %p2487_p11 = pnand %p2486_p10, %p2480_p4 }
 0x4f1   : > { %2490 = shalt.err (!%p2487_p11)
}
 0x4f2   : > { %s2583_s23 = smov 128   ;;  %s2584_s13 = smov 8  }
 0x4f3   : > { %2321 = dma.vmem_to_hbm [thread:$0]  (%p2687_p7), %s3205_s12, 768, %s3203_s7, %s3209_s6, %s2583_s23, %s2583_s23, %s2584_s13  }
 0x4f4 PF: > { %p2327_p13 = scmp.ge.s32.totalorder %s2573_s27, 2  ;;  %s1737_s10 = sand.u32 1, %s2537_s18  }
 0x4f5   : > { %s1738_s21 = scalar_lea.sflag [#allocation6], %s1737_s10 }
 0x4f6   : > { %p2324_p0 = pnand %p2327_p13, %p2695_p12 }
 0x4f8   : > { %2532 = dma.done.wait (!%p2324_p0), %s1738_s21, 768  }
 0x4f9   : > { %2534 = vsyncadd (!%p2324_p0), %s1738_s21, 4294966528  ;;  %s18_s27 = sadd.s32 1, %s2573_s27   ;;  %s3288_s23 = sld [smem:[#allocation8_spill]] }
 0x4fa   : > { %p15_p1 = scmp.ge.s32.totalorder %s18_s27, 8   ;;  %s3289_s24 = sld [smem:[#allocation9_spill]] }
 0x4fb   : > { %s3290_s25 = sld [smem:[#allocation10_spill]]  ;;  %s3291_s26 = sld [smem:[#allocation11_spill]] }
 0x4fc   : > { %s3292_s18 = smov %s2541_s19  ;;  %s3293_s19 = smov %s2545_s20 }
 0x4fd   : > { %s3294_s20 = smov %s2700_s15  ;;  %s3295_s21 = smov %s2553_s22 }
 0x4fe   : > { %s3296_s22 = smov %s2703_s16  ;;  %17 = sbr.rel (!%p15_p1) target bundleno = 8 (0x8), region = 135 }
 0x505   :  { %1743 = vsyncpa [#allocation6], 1 }
 0x506   :  { %1745 = vsyncpa [#allocation6 + $0x1], 1 }

</bundles_post_ra>
